<compile_context>
chip_gen: v7x
topology: tpu7x:2x2x1
jax: 0.10.0
libtpu: 0.0.40
codegen_flags: <defaults>
</compile_context>

<pallas_src>
import functools

import numpy as np
import jax
import jax.numpy as jnp
from jax import lax
from jax.experimental import pallas as pl
from jax.experimental.pallas import tpu as pltpu


B_BLK = 8  # images per grid step (batch is zero-padded up to a multiple of 8)
# NOTE(v7x): with 2 TensorCores per chip, pick the real batch so that
# n_blocks = ceil(n / B_BLK) is even; the grid axis is marked "parallel".


def _round_up(a, m):
    return (a + m - 1) // m * m


def _pool_selector(h, w, p_in, wp_in, p_out, wp_out, pad_out):
    """One-hot (p_in, p_out) gather matrix for 2x2/stride-2 max pooling.

    The kernel first reduces each 2x2 window onto its top-left lane with two
    lane rolls + maxes; right-multiplying by this selector then gathers the
    stride-2 top-left lanes of the padded-flat map into the next layer's
    layout.  With pad_out=True the all-zero selector columns produce the next
    conv's zero-padding border for free.
    """
    h2, w2 = h // 2, w // 2
    off = 1 if pad_out else 0
    sel = np.zeros((p_in, p_out), np.float32)
    for i in range(h2):
        for j in range(w2):
            r, c = 1 + 2 * i, 1 + 2 * j   # window top-left, padded coords
            # Trace-time guard (review correctness concern): the gathered 2x2
            # window [r:r+2, c:c+2] must lie in the valid interior of the
            # padded conv-output map, never in roll wrap-around garbage lanes.
            assert 1 <= r and r + 1 <= h and 1 <= c and c + 1 <= w
            src = r * wp_in + c
            dst = (off + i) * wp_out + (off + j)
            assert 0 <= src < p_in and 0 <= dst < p_out
            sel[src, dst] = 1.0
    return sel


def simple_cnn_kernel(x_ref, w1_ref, b1_ref, w2_ref, b2_ref,
                      sel1_ref, sel2_ref, out_ref, *, wp1, wp2):
    # x_ref   : (B*Cin,  P1)        padded inputs, spatial map on lanes
    # w1_ref  : (9, B*C1, B*Cin)    per-tap block-diagonal kron(I_B, W) weights
    # b1_ref  : (B*C1, 1)
    # w2_ref  : (9, B*C2, B*C1)
    # b2_ref  : (B*C2, 1)
    # sel1_ref: (P1, P2)            pool1 gather selector (re-pads for conv2)
    # sel2_ref: (P2, QP)            pool2 gather selector (QP = q lane-padded)
    # out_ref : (B*C2, QP)          lane-dense output block

    def conv3x3_relu(x, wk_ref, b_ref, row_stride):
        # 3x3 same-padding conv on the padded-flat layout: 9 static lane rolls
        # (XLU) produce the im2col taps; each tap feeds one MXU matmul against
        # its block-diagonal weight, accumulated in f32 (no misaligned
        # concatenate).  Border lanes hold wrap garbage but are never gathered
        # by the pooling selectors.
        p = x.shape[-1]
        acc = None
        for dy in range(3):
            for dx in range(3):
                s = (dy - 1) * row_stride + (dx - 1)
                tap = x if s == 0 else pltpu.roll(x, shift=(-s) % p, axis=1)
                y = jnp.dot(wk_ref[dy * 3 + dx], tap,
                            preferred_element_type=jnp.float32)
                acc = y if acc is None else acc + y
        return jnp.maximum(acc + b_ref[...], 0.0)

    def maxpool2x2(y, sel_ref, row_stride):
        # Reduce each 2x2 window onto its top-left lane (VPU/XLU), then ONE
        # one-hot gather matmul picks the stride-2 top-left lanes into the
        # pooled (re-padded / lane-dense) layout.
        p = y.shape[-1]
        z = jnp.maximum(y, pltpu.roll(y, shift=p - 1, axis=1))
        z = jnp.maximum(z, pltpu.roll(z, shift=p - row_stride, axis=1))
        return jnp.dot(z, sel_ref[...], preferred_element_type=jnp.float32)

    y1 = conv3x3_relu(x_ref[...], w1_ref, b1_ref, wp1)    # (B*C1, P1)
    p1 = maxpool2x2(y1, sel1_ref, wp1)                    # (B*C1, P2) re-padded
    y2 = conv3x3_relu(p1, w2_ref, b2_ref, wp2)            # (B*C2, P2)
    out_ref[...] = maxpool2x2(y2, sel2_ref, wp2)          # (B*C2, QP)


@jax.jit
def simple_cnn_forward(x, w1, b1, w2, b2):
    """x: (N, 3, H, W) float32 NCHW. Returns (N, Cout2*(H//4)*(W//4))."""
    n, cin, h, w = x.shape
    cout1, cout2 = w1.shape[0], w2.shape[0]
    assert h % 4 == 0 and w % 4 == 0, "H, W must be multiples of 4"

    hp1, wp1 = h + 2, w + 2
    h_half, w_half = h // 2, w // 2
    hp2, wp2 = h_half + 2, w_half + 2
    q = (h // 4) * (w // 4)
    p1 = _round_up(hp1 * wp1, 128)
    p2 = _round_up(hp2 * wp2, 128)
    qp = _round_up(q, 128)                     # lane-dense output block width

    n_pad = _round_up(n, B_BLK)
    n_blk = n_pad // B_BLK

    # v7x guard: one-hot selectors scale as O((H*W)^2); keep them well inside
    # the scoped-VMEM limit.
    # TODO(synk): switch pooling compaction to pure roll/shift gathers for
    # large H, W where the selector matrices would not fit VMEM.
    sel_bytes = 4 * (p1 * p2 + p2 * qp)
    assert sel_bytes < 8 * 1024 * 1024, (
        f"pooling selectors ({sel_bytes} B) too large for VMEM at this H, W")

    # glue: pad batch to B_BLK, zero-pad spatially, flatten row-major onto
    # lanes, lane-pad to a 128 multiple, fold batch into the sublane axis.
    xb = jnp.pad(x, ((0, n_pad - n), (0, 0), (1, 1), (1, 1)))
    xb = xb.reshape(n_pad, cin, hp1 * wp1)
    xb = jnp.pad(xb, ((0, 0), (0, 0), (0, p1 - hp1 * wp1)))
    xb = xb.reshape(n_blk, B_BLK * cin, p1)

    # glue: per-tap block-diagonal weights kron(I_B, W[:, :, dy, dx]) and
    # batch-replicated bias columns (rows ordered b*Cout + o).
    eye = jnp.eye(B_BLK, dtype=jnp.float32)
    w1big = jnp.stack([jnp.kron(eye, w1[:, :, dy, dx])
                       for dy in range(3) for dx in range(3)])  # (9, B*C1, B*Cin)
    w2big = jnp.stack([jnp.kron(eye, w2[:, :, dy, dx])
                       for dy in range(3) for dx in range(3)])  # (9, B*C2, B*C1)
    b1c = jnp.tile(b1, (B_BLK,)).reshape(B_BLK * cout1, 1)
    b2c = jnp.tile(b2, (B_BLK,)).reshape(B_BLK * cout2, 1)

    # constant pooling selectors (numpy at trace time -> DMA'd to VMEM once)
    sel1 = jnp.asarray(_pool_selector(h, w, p1, wp1, p2, wp2, pad_out=True))
    sel2 = jnp.asarray(_pool_selector(h_half, w_half, p2, wp2, qp, w // 4,
                                      pad_out=False))

    flops_blk = (9 * 2 * (B_BLK * cout1) * (B_BLK * cin) * p1
                 + 2 * (B_BLK * cout1) * p1 * p2
                 + 9 * 2 * (B_BLK * cout2) * (B_BLK * cout1) * p2
                 + 2 * (B_BLK * cout2) * p2 * qp)
    bytes_accessed = 4 * (n_blk * (B_BLK * cin * p1 + B_BLK * cout2 * qp)
                          + w1big.size + w2big.size + b1c.size + b2c.size
                          + sel1.size + sel2.size)

    out = pl.pallas_call(
        functools.partial(simple_cnn_kernel, wp1=wp1, wp2=wp2),
        out_shape=jax.ShapeDtypeStruct((n_blk, B_BLK * cout2, qp), jnp.float32),
        grid_spec=pltpu.PrefetchScalarGridSpec(
            num_scalar_prefetch=0,
            grid=(n_blk,),
            in_specs=[
                pl.BlockSpec((None, B_BLK * cin, p1), lambda b: (b, 0, 0)),
                # Grid-invariant operands: constant index_maps => fetched once.
                pl.BlockSpec((9, B_BLK * cout1, B_BLK * cin), lambda b: (0, 0, 0)),
                pl.BlockSpec((B_BLK * cout1, 1), lambda b: (0, 0)),
                pl.BlockSpec((9, B_BLK * cout2, B_BLK * cout1), lambda b: (0, 0, 0)),
                pl.BlockSpec((B_BLK * cout2, 1), lambda b: (0, 0)),
                pl.BlockSpec((p1, p2), lambda b: (0, 0)),
                pl.BlockSpec((p2, qp), lambda b: (0, 0)),
            ],
            out_specs=pl.BlockSpec((None, B_BLK * cout2, qp), lambda b: (b, 0, 0)),
        ),
        compiler_params=pltpu.CompilerParams(
            dimension_semantics=("parallel",),
            vmem_limit_bytes=32 * 1024 * 1024),
        cost_estimate=pl.CostEstimate(flops=n_blk * flops_blk, transcendentals=0,
                                      bytes_accessed=bytes_accessed),
    )(xb, w1big, b1c, w2big, b2c, sel1, sel2)

    # glue: drop lane padding, un-block the batch, flatten channel-major
    # (matches torch.nn.Flatten on NCHW), drop padded batch rows.
    out = out[:, :, :q].reshape(n_pad, cout2 * q)
    return out[:n]


def reference_forward(x, w1, b1, w2, b2):
    dn = ("NCHW", "OIHW", "NCHW")
    y = lax.conv_general_dilated(x, w1, (1, 1), ((1, 1), (1, 1)), dimension_numbers=dn)
    y = jnp.maximum(y + b1[None, :, None, None], 0.0)
    y = lax.reduce_window(y, -jnp.inf, lax.max, (1, 1, 2, 2), (1, 1, 2, 2), "VALID")
    y = lax.conv_general_dilated(y, w2, (1, 1), ((1, 1), (1, 1)), dimension_numbers=dn)
    y = jnp.maximum(y + b2[None, :, None, None], 0.0)
    y = lax.reduce_window(y, -jnp.inf, lax.max, (1, 1, 2, 2), (1, 1, 2, 2), "VALID")
    return y.reshape(x.shape[0], -1)


if __name__ == "__main__":
    key = jax.random.PRNGKey(0)
    kx, k1, k2, k3, k4 = jax.random.split(key, 5)

    # SimpleCNN parameter shapes (deterministic synthetic init, PyTorch-like scale)
    fan1 = 3 * 3 * 3
    fan2 = 2 * 3 * 3
    w1 = jax.random.uniform(k1, (2, 3, 3, 3), jnp.float32, -1.0, 1.0) / jnp.sqrt(fan1)
    b1 = jax.random.uniform(k2, (2,), jnp.float32, -1.0, 1.0) / jnp.sqrt(fan1)
    w2 = jax.random.uniform(k3, (2, 2, 3, 3), jnp.float32, -1.0, 1.0) / jnp.sqrt(fan2)
    b2 = jax.random.uniform(k4, (2,), jnp.float32, -1.0, 1.0) / jnp.sqrt(fan2)

    x = jax.random.normal(kx, (2, 3, 16, 16), jnp.float32)  # NCHW

    out = jax.block_until_ready(simple_cnn_forward(x, w1, b1, w2, b2))

    ref = reference_forward(x, w1, b1, w2, b2)
    assert out.shape == (2, 2 * 4 * 4), out.shape
    assert jnp.allclose(out, ref, atol=5e-4, rtol=5e-4), float(jnp.max(jnp.abs(out - ref)))

    print("KERNEL_OK")
</pallas_src>

<mosaic_0001>
module attributes {stable_mosaic.version = 11 : i64} {
  func.func @simple_cnn_kernel(%arg0: i32, %arg1: memref<1x24x384xf32, #tpu.memory_space<vmem>>, %arg2: memref<9x16x24xf32, #tpu.memory_space<vmem>>, %arg3: memref<16x1xf32, #tpu.memory_space<vmem>>, %arg4: memref<9x16x16xf32, #tpu.memory_space<vmem>>, %arg5: memref<16x1xf32, #tpu.memory_space<vmem>>, %arg6: memref<384x128xf32, #tpu.memory_space<vmem>>, %arg7: memref<128x128xf32, #tpu.memory_space<vmem>>, %arg8: memref<1x16x128xf32, #tpu.memory_space<vmem>>) attributes {dimension_semantics = [#tpu.dimension_semantics<parallel>], iteration_bounds = array<i64: 1>, scalar_prefetch = 0 : i64, scratch_operands = 0 : i64, tpu.core_type = #tpu.core_type<tc>, window_params = [{transform_indices = @transform_0, window_bounds = array<i64: 1, 24, 384>}, {pipeline_mode = #tpu.pipeline_mode<synchronous>, transform_indices = @transform_1, window_bounds = array<i64: 9, 16, 24>}, {pipeline_mode = #tpu.pipeline_mode<synchronous>, transform_indices = @transform_2, window_bounds = array<i64: 16, 1>}, {pipeline_mode = #tpu.pipeline_mode<synchronous>, transform_indices = @transform_3, window_bounds = array<i64: 9, 16, 16>}, {pipeline_mode = #tpu.pipeline_mode<synchronous>, transform_indices = @transform_4, window_bounds = array<i64: 16, 1>}, {pipeline_mode = #tpu.pipeline_mode<synchronous>, transform_indices = @transform_5, window_bounds = array<i64: 384, 128>}, {pipeline_mode = #tpu.pipeline_mode<synchronous>, transform_indices = @transform_6, window_bounds = array<i64: 128, 128>}, {transform_indices = @transform_7, window_bounds = array<i64: 1, 16, 128>}]} {
    %c0 = arith.constant 0 : index
    %c0_0 = arith.constant 0 : index
    %c0_1 = arith.constant 0 : index
    %0 = vector.load %arg1[%c0, %c0_0, %c0_1] : memref<1x24x384xf32, #tpu.memory_space<vmem>>, vector<1x24x384xf32>
    %1 = vector.shape_cast %0 : vector<1x24x384xf32> to vector<24x384xf32>
    %c19_i32 = arith.constant 19 : i32
    %2 = tpu.dynamic_rotate %1 by %c19_i32 dim 1 : vector<24x384xf32>, i32 -> vector<24x384xf32>
    %c0_2 = arith.constant 0 : index
    %c0_3 = arith.constant 0 : index
    %c0_4 = arith.constant 0 : index
    %3 = vector.load %arg2[%c0_2, %c0_3, %c0_4] : memref<9x16x24xf32, #tpu.memory_space<vmem>>, vector<1x16x24xf32>
    %4 = vector.shape_cast %3 : vector<1x16x24xf32> to vector<16x24xf32>
    %cst = arith.constant dense<0.000000e+00> : vector<16x384xf32>
    %5 = tpu.matmul %4, %2, %cst {dimension_numbers = #tpu.dot_dimension_numbers<[1], [0], [0], [1], [0, 0, 1, 1], [], []>} : vector<16x24xf32>, vector<24x384xf32>, vector<16x384xf32> -> vector<16x384xf32>
    %c18_i32 = arith.constant 18 : i32
    %6 = tpu.dynamic_rotate %1 by %c18_i32 dim 1 : vector<24x384xf32>, i32 -> vector<24x384xf32>
    %c1 = arith.constant 1 : index
    %c0_5 = arith.constant 0 : index
    %c0_6 = arith.constant 0 : index
    %7 = vector.load %arg2[%c1, %c0_5, %c0_6] : memref<9x16x24xf32, #tpu.memory_space<vmem>>, vector<1x16x24xf32>
    %8 = vector.shape_cast %7 : vector<1x16x24xf32> to vector<16x24xf32>
    %cst_7 = arith.constant dense<0.000000e+00> : vector<16x384xf32>
    %9 = tpu.matmul %8, %6, %cst_7 {dimension_numbers = #tpu.dot_dimension_numbers<[1], [0], [0], [1], [0, 0, 1, 1], [], []>} : vector<16x24xf32>, vector<24x384xf32>, vector<16x384xf32> -> vector<16x384xf32>
    %10 = arith.addf %5, %9 : vector<16x384xf32>
    %c17_i32 = arith.constant 17 : i32
    %11 = tpu.dynamic_rotate %1 by %c17_i32 dim 1 : vector<24x384xf32>, i32 -> vector<24x384xf32>
    %c2 = arith.constant 2 : index
    %c0_8 = arith.constant 0 : index
    %c0_9 = arith.constant 0 : index
    %12 = vector.load %arg2[%c2, %c0_8, %c0_9] : memref<9x16x24xf32, #tpu.memory_space<vmem>>, vector<1x16x24xf32>
    %13 = vector.shape_cast %12 : vector<1x16x24xf32> to vector<16x24xf32>
    %cst_10 = arith.constant dense<0.000000e+00> : vector<16x384xf32>
    %14 = tpu.matmul %13, %11, %cst_10 {dimension_numbers = #tpu.dot_dimension_numbers<[1], [0], [0], [1], [0, 0, 1, 1], [], []>} : vector<16x24xf32>, vector<24x384xf32>, vector<16x384xf32> -> vector<16x384xf32>
    %15 = arith.addf %10, %14 : vector<16x384xf32>
    %c1_i32 = arith.constant 1 : i32
    %16 = tpu.dynamic_rotate %1 by %c1_i32 dim 1 : vector<24x384xf32>, i32 -> vector<24x384xf32>
    %c3 = arith.constant 3 : index
    %c0_11 = arith.constant 0 : index
    %c0_12 = arith.constant 0 : index
    %17 = vector.load %arg2[%c3, %c0_11, %c0_12] : memref<9x16x24xf32, #tpu.memory_space<vmem>>, vector<1x16x24xf32>
    %18 = vector.shape_cast %17 : vector<1x16x24xf32> to vector<16x24xf32>
    %cst_13 = arith.constant dense<0.000000e+00> : vector<16x384xf32>
    %19 = tpu.matmul %18, %16, %cst_13 {dimension_numbers = #tpu.dot_dimension_numbers<[1], [0], [0], [1], [0, 0, 1, 1], [], []>} : vector<16x24xf32>, vector<24x384xf32>, vector<16x384xf32> -> vector<16x384xf32>
    %20 = arith.addf %15, %19 : vector<16x384xf32>
    %c4 = arith.constant 4 : index
    %c0_14 = arith.constant 0 : index
    %c0_15 = arith.constant 0 : index
    %21 = vector.load %arg2[%c4, %c0_14, %c0_15] : memref<9x16x24xf32, #tpu.memory_space<vmem>>, vector<1x16x24xf32>
    %22 = vector.shape_cast %21 : vector<1x16x24xf32> to vector<16x24xf32>
    %cst_16 = arith.constant dense<0.000000e+00> : vector<16x384xf32>
    %23 = tpu.matmul %22, %1, %cst_16 {dimension_numbers = #tpu.dot_dimension_numbers<[1], [0], [0], [1], [0, 0, 1, 1], [], []>} : vector<16x24xf32>, vector<24x384xf32>, vector<16x384xf32> -> vector<16x384xf32>
    %24 = arith.addf %20, %23 : vector<16x384xf32>
    %c383_i32 = arith.constant 383 : i32
    %25 = tpu.dynamic_rotate %1 by %c383_i32 dim 1 : vector<24x384xf32>, i32 -> vector<24x384xf32>
    %c5 = arith.constant 5 : index
    %c0_17 = arith.constant 0 : index
    %c0_18 = arith.constant 0 : index
    %26 = vector.load %arg2[%c5, %c0_17, %c0_18] : memref<9x16x24xf32, #tpu.memory_space<vmem>>, vector<1x16x24xf32>
    %27 = vector.shape_cast %26 : vector<1x16x24xf32> to vector<16x24xf32>
    %cst_19 = arith.constant dense<0.000000e+00> : vector<16x384xf32>
    %28 = tpu.matmul %27, %25, %cst_19 {dimension_numbers = #tpu.dot_dimension_numbers<[1], [0], [0], [1], [0, 0, 1, 1], [], []>} : vector<16x24xf32>, vector<24x384xf32>, vector<16x384xf32> -> vector<16x384xf32>
    %29 = arith.addf %24, %28 : vector<16x384xf32>
    %c367_i32 = arith.constant 367 : i32
    %30 = tpu.dynamic_rotate %1 by %c367_i32 dim 1 : vector<24x384xf32>, i32 -> vector<24x384xf32>
    %c6 = arith.constant 6 : index
    %c0_20 = arith.constant 0 : index
    %c0_21 = arith.constant 0 : index
    %31 = vector.load %arg2[%c6, %c0_20, %c0_21] : memref<9x16x24xf32, #tpu.memory_space<vmem>>, vector<1x16x24xf32>
    %32 = vector.shape_cast %31 : vector<1x16x24xf32> to vector<16x24xf32>
    %cst_22 = arith.constant dense<0.000000e+00> : vector<16x384xf32>
    %33 = tpu.matmul %32, %30, %cst_22 {dimension_numbers = #tpu.dot_dimension_numbers<[1], [0], [0], [1], [0, 0, 1, 1], [], []>} : vector<16x24xf32>, vector<24x384xf32>, vector<16x384xf32> -> vector<16x384xf32>
    %34 = arith.addf %29, %33 : vector<16x384xf32>
    %c366_i32 = arith.constant 366 : i32
    %35 = tpu.dynamic_rotate %1 by %c366_i32 dim 1 : vector<24x384xf32>, i32 -> vector<24x384xf32>
    %c7 = arith.constant 7 : index
    %c0_23 = arith.constant 0 : index
    %c0_24 = arith.constant 0 : index
    %36 = vector.load %arg2[%c7, %c0_23, %c0_24] : memref<9x16x24xf32, #tpu.memory_space<vmem>>, vector<1x16x24xf32>
    %37 = vector.shape_cast %36 : vector<1x16x24xf32> to vector<16x24xf32>
    %cst_25 = arith.constant dense<0.000000e+00> : vector<16x384xf32>
    %38 = tpu.matmul %37, %35, %cst_25 {dimension_numbers = #tpu.dot_dimension_numbers<[1], [0], [0], [1], [0, 0, 1, 1], [], []>} : vector<16x24xf32>, vector<24x384xf32>, vector<16x384xf32> -> vector<16x384xf32>
    %39 = arith.addf %34, %38 : vector<16x384xf32>
    %c365_i32 = arith.constant 365 : i32
    %40 = tpu.dynamic_rotate %1 by %c365_i32 dim 1 : vector<24x384xf32>, i32 -> vector<24x384xf32>
    %c8 = arith.constant 8 : index
    %c0_26 = arith.constant 0 : index
    %c0_27 = arith.constant 0 : index
    %41 = vector.load %arg2[%c8, %c0_26, %c0_27] : memref<9x16x24xf32, #tpu.memory_space<vmem>>, vector<1x16x24xf32>
    %42 = vector.shape_cast %41 : vector<1x16x24xf32> to vector<16x24xf32>
    %cst_28 = arith.constant dense<0.000000e+00> : vector<16x384xf32>
    %43 = tpu.matmul %42, %40, %cst_28 {dimension_numbers = #tpu.dot_dimension_numbers<[1], [0], [0], [1], [0, 0, 1, 1], [], []>} : vector<16x24xf32>, vector<24x384xf32>, vector<16x384xf32> -> vector<16x384xf32>
    %44 = arith.addf %39, %43 : vector<16x384xf32>
    %c0_29 = arith.constant 0 : index
    %c0_30 = arith.constant 0 : index
    %45 = vector.load %arg3[%c0_29, %c0_30] : memref<16x1xf32, #tpu.memory_space<vmem>>, vector<16x1xf32>
    %46 = vector.broadcast %45 : vector<16x1xf32> to vector<16x384xf32>
    %47 = arith.addf %44, %46 : vector<16x384xf32>
    %cst_31 = arith.constant 0.000000e+00 : f32
    %48 = vector.broadcast %cst_31 : f32 to vector<16x384xf32>
    %49 = arith.maximumf %47, %48 : vector<16x384xf32>
    %c383_i32_32 = arith.constant 383 : i32
    %50 = tpu.dynamic_rotate %49 by %c383_i32_32 dim 1 : vector<16x384xf32>, i32 -> vector<16x384xf32>
    %51 = arith.maximumf %49, %50 : vector<16x384xf32>
    %c366_i32_33 = arith.constant 366 : i32
    %52 = tpu.dynamic_rotate %51 by %c366_i32_33 dim 1 : vector<16x384xf32>, i32 -> vector<16x384xf32>
    %53 = arith.maximumf %51, %52 : vector<16x384xf32>
    %c0_34 = arith.constant 0 : index
    %c0_35 = arith.constant 0 : index
    %54 = vector.load %arg6[%c0_34, %c0_35] : memref<384x128xf32, #tpu.memory_space<vmem>>, vector<384x128xf32>
    %cst_36 = arith.constant dense<0.000000e+00> : vector<16x128xf32>
    %55 = tpu.matmul %53, %54, %cst_36 {dimension_numbers = #tpu.dot_dimension_numbers<[1], [0], [0], [1], [0, 0, 1, 1], [], []>} : vector<16x384xf32>, vector<384x128xf32>, vector<16x128xf32> -> vector<16x128xf32>
    %c11_i32 = arith.constant 11 : i32
    %56 = tpu.dynamic_rotate %55 by %c11_i32 dim 1 : vector<16x128xf32>, i32 -> vector<16x128xf32>
    %c0_37 = arith.constant 0 : index
    %c0_38 = arith.constant 0 : index
    %c0_39 = arith.constant 0 : index
    %57 = vector.load %arg4[%c0_37, %c0_38, %c0_39] : memref<9x16x16xf32, #tpu.memory_space<vmem>>, vector<1x16x16xf32>
    %58 = vector.shape_cast %57 : vector<1x16x16xf32> to vector<16x16xf32>
    %cst_40 = arith.constant dense<0.000000e+00> : vector<16x128xf32>
    %59 = tpu.matmul %58, %56, %cst_40 {dimension_numbers = #tpu.dot_dimension_numbers<[1], [0], [0], [1], [0, 0, 1, 1], [], []>} : vector<16x16xf32>, vector<16x128xf32>, vector<16x128xf32> -> vector<16x128xf32>
    %c10_i32 = arith.constant 10 : i32
    %60 = tpu.dynamic_rotate %55 by %c10_i32 dim 1 : vector<16x128xf32>, i32 -> vector<16x128xf32>
    %c1_41 = arith.constant 1 : index
    %c0_42 = arith.constant 0 : index
    %c0_43 = arith.constant 0 : index
    %61 = vector.load %arg4[%c1_41, %c0_42, %c0_43] : memref<9x16x16xf32, #tpu.memory_space<vmem>>, vector<1x16x16xf32>
    %62 = vector.shape_cast %61 : vector<1x16x16xf32> to vector<16x16xf32>
    %cst_44 = arith.constant dense<0.000000e+00> : vector<16x128xf32>
    %63 = tpu.matmul %62, %60, %cst_44 {dimension_numbers = #tpu.dot_dimension_numbers<[1], [0], [0], [1], [0, 0, 1, 1], [], []>} : vector<16x16xf32>, vector<16x128xf32>, vector<16x128xf32> -> vector<16x128xf32>
    %64 = arith.addf %59, %63 : vector<16x128xf32>
    %c9_i32 = arith.constant 9 : i32
    %65 = tpu.dynamic_rotate %55 by %c9_i32 dim 1 : vector<16x128xf32>, i32 -> vector<16x128xf32>
    %c2_45 = arith.constant 2 : index
    %c0_46 = arith.constant 0 : index
    %c0_47 = arith.constant 0 : index
    %66 = vector.load %arg4[%c2_45, %c0_46, %c0_47] : memref<9x16x16xf32, #tpu.memory_space<vmem>>, vector<1x16x16xf32>
    %67 = vector.shape_cast %66 : vector<1x16x16xf32> to vector<16x16xf32>
    %cst_48 = arith.constant dense<0.000000e+00> : vector<16x128xf32>
    %68 = tpu.matmul %67, %65, %cst_48 {dimension_numbers = #tpu.dot_dimension_numbers<[1], [0], [0], [1], [0, 0, 1, 1], [], []>} : vector<16x16xf32>, vector<16x128xf32>, vector<16x128xf32> -> vector<16x128xf32>
    %69 = arith.addf %64, %68 : vector<16x128xf32>
    %c1_i32_49 = arith.constant 1 : i32
    %70 = tpu.dynamic_rotate %55 by %c1_i32_49 dim 1 : vector<16x128xf32>, i32 -> vector<16x128xf32>
    %c3_50 = arith.constant 3 : index
    %c0_51 = arith.constant 0 : index
    %c0_52 = arith.constant 0 : index
    %71 = vector.load %arg4[%c3_50, %c0_51, %c0_52] : memref<9x16x16xf32, #tpu.memory_space<vmem>>, vector<1x16x16xf32>
    %72 = vector.shape_cast %71 : vector<1x16x16xf32> to vector<16x16xf32>
    %cst_53 = arith.constant dense<0.000000e+00> : vector<16x128xf32>
    %73 = tpu.matmul %72, %70, %cst_53 {dimension_numbers = #tpu.dot_dimension_numbers<[1], [0], [0], [1], [0, 0, 1, 1], [], []>} : vector<16x16xf32>, vector<16x128xf32>, vector<16x128xf32> -> vector<16x128xf32>
    %74 = arith.addf %69, %73 : vector<16x128xf32>
    %c4_54 = arith.constant 4 : index
    %c0_55 = arith.constant 0 : index
    %c0_56 = arith.constant 0 : index
    %75 = vector.load %arg4[%c4_54, %c0_55, %c0_56] : memref<9x16x16xf32, #tpu.memory_space<vmem>>, vector<1x16x16xf32>
    %76 = vector.shape_cast %75 : vector<1x16x16xf32> to vector<16x16xf32>
    %cst_57 = arith.constant dense<0.000000e+00> : vector<16x128xf32>
    %77 = tpu.matmul %76, %55, %cst_57 {dimension_numbers = #tpu.dot_dimension_numbers<[1], [0], [0], [1], [0, 0, 1, 1], [], []>} : vector<16x16xf32>, vector<16x128xf32>, vector<16x128xf32> -> vector<16x128xf32>
    %78 = arith.addf %74, %77 : vector<16x128xf32>
    %c127_i32 = arith.constant 127 : i32
    %79 = tpu.dynamic_rotate %55 by %c127_i32 dim 1 : vector<16x128xf32>, i32 -> vector<16x128xf32>
    %c5_58 = arith.constant 5 : index
    %c0_59 = arith.constant 0 : index
    %c0_60 = arith.constant 0 : index
    %80 = vector.load %arg4[%c5_58, %c0_59, %c0_60] : memref<9x16x16xf32, #tpu.memory_space<vmem>>, vector<1x16x16xf32>
    %81 = vector.shape_cast %80 : vector<1x16x16xf32> to vector<16x16xf32>
    %cst_61 = arith.constant dense<0.000000e+00> : vector<16x128xf32>
    %82 = tpu.matmul %81, %79, %cst_61 {dimension_numbers = #tpu.dot_dimension_numbers<[1], [0], [0], [1], [0, 0, 1, 1], [], []>} : vector<16x16xf32>, vector<16x128xf32>, vector<16x128xf32> -> vector<16x128xf32>
    %83 = arith.addf %78, %82 : vector<16x128xf32>
    %c119_i32 = arith.constant 119 : i32
    %84 = tpu.dynamic_rotate %55 by %c119_i32 dim 1 : vector<16x128xf32>, i32 -> vector<16x128xf32>
    %c6_62 = arith.constant 6 : index
    %c0_63 = arith.constant 0 : index
    %c0_64 = arith.constant 0 : index
    %85 = vector.load %arg4[%c6_62, %c0_63, %c0_64] : memref<9x16x16xf32, #tpu.memory_space<vmem>>, vector<1x16x16xf32>
    %86 = vector.shape_cast %85 : vector<1x16x16xf32> to vector<16x16xf32>
    %cst_65 = arith.constant dense<0.000000e+00> : vector<16x128xf32>
    %87 = tpu.matmul %86, %84, %cst_65 {dimension_numbers = #tpu.dot_dimension_numbers<[1], [0], [0], [1], [0, 0, 1, 1], [], []>} : vector<16x16xf32>, vector<16x128xf32>, vector<16x128xf32> -> vector<16x128xf32>
    %88 = arith.addf %83, %87 : vector<16x128xf32>
    %c118_i32 = arith.constant 118 : i32
    %89 = tpu.dynamic_rotate %55 by %c118_i32 dim 1 : vector<16x128xf32>, i32 -> vector<16x128xf32>
    %c7_66 = arith.constant 7 : index
    %c0_67 = arith.constant 0 : index
    %c0_68 = arith.constant 0 : index
    %90 = vector.load %arg4[%c7_66, %c0_67, %c0_68] : memref<9x16x16xf32, #tpu.memory_space<vmem>>, vector<1x16x16xf32>
    %91 = vector.shape_cast %90 : vector<1x16x16xf32> to vector<16x16xf32>
    %cst_69 = arith.constant dense<0.000000e+00> : vector<16x128xf32>
    %92 = tpu.matmul %91, %89, %cst_69 {dimension_numbers = #tpu.dot_dimension_numbers<[1], [0], [0], [1], [0, 0, 1, 1], [], []>} : vector<16x16xf32>, vector<16x128xf32>, vector<16x128xf32> -> vector<16x128xf32>
    %93 = arith.addf %88, %92 : vector<16x128xf32>
    %c117_i32 = arith.constant 117 : i32
    %94 = tpu.dynamic_rotate %55 by %c117_i32 dim 1 : vector<16x128xf32>, i32 -> vector<16x128xf32>
    %c8_70 = arith.constant 8 : index
    %c0_71 = arith.constant 0 : index
    %c0_72 = arith.constant 0 : index
    %95 = vector.load %arg4[%c8_70, %c0_71, %c0_72] : memref<9x16x16xf32, #tpu.memory_space<vmem>>, vector<1x16x16xf32>
    %96 = vector.shape_cast %95 : vector<1x16x16xf32> to vector<16x16xf32>
    %cst_73 = arith.constant dense<0.000000e+00> : vector<16x128xf32>
    %97 = tpu.matmul %96, %94, %cst_73 {dimension_numbers = #tpu.dot_dimension_numbers<[1], [0], [0], [1], [0, 0, 1, 1], [], []>} : vector<16x16xf32>, vector<16x128xf32>, vector<16x128xf32> -> vector<16x128xf32>
    %98 = arith.addf %93, %97 : vector<16x128xf32>
    %c0_74 = arith.constant 0 : index
    %c0_75 = arith.constant 0 : index
    %99 = vector.load %arg5[%c0_74, %c0_75] : memref<16x1xf32, #tpu.memory_space<vmem>>, vector<16x1xf32>
    %100 = vector.broadcast %99 : vector<16x1xf32> to vector<16x128xf32>
    %101 = arith.addf %98, %100 : vector<16x128xf32>
    %cst_76 = arith.constant 0.000000e+00 : f32
    %102 = vector.broadcast %cst_76 : f32 to vector<16x128xf32>
    %103 = arith.maximumf %101, %102 : vector<16x128xf32>
    %c127_i32_77 = arith.constant 127 : i32
    %104 = tpu.dynamic_rotate %103 by %c127_i32_77 dim 1 : vector<16x128xf32>, i32 -> vector<16x128xf32>
    %105 = arith.maximumf %103, %104 : vector<16x128xf32>
    %c118_i32_78 = arith.constant 118 : i32
    %106 = tpu.dynamic_rotate %105 by %c118_i32_78 dim 1 : vector<16x128xf32>, i32 -> vector<16x128xf32>
    %107 = arith.maximumf %105, %106 : vector<16x128xf32>
    %c0_79 = arith.constant 0 : index
    %c0_80 = arith.constant 0 : index
    %108 = vector.load %arg7[%c0_79, %c0_80] : memref<128x128xf32, #tpu.memory_space<vmem>>, vector<128x128xf32>
    %cst_81 = arith.constant dense<0.000000e+00> : vector<16x128xf32>
    %109 = tpu.matmul %107, %108, %cst_81 {dimension_numbers = #tpu.dot_dimension_numbers<[1], [0], [0], [1], [0, 0, 1, 1], [], []>} : vector<16x128xf32>, vector<128x128xf32>, vector<16x128xf32> -> vector<16x128xf32>
    %c0_82 = arith.constant 0 : index
    %c0_83 = arith.constant 0 : index
    %c0_84 = arith.constant 0 : index
    %110 = vector.load %arg8[%c0_82, %c0_83, %c0_84] : memref<1x16x128xf32, #tpu.memory_space<vmem>>, vector<1x16x128xf32>
    %111 = vector.shape_cast %110 : vector<1x16x128xf32> to vector<16x128xf32>
    %112 = vector.shape_cast %109 : vector<16x128xf32> to vector<1x16x128xf32>
    tpu.vector_store %arg8[%c0_82, %c0_83, %c0_84], %112 {strides = array<i32>} : memref<1x16x128xf32, #tpu.memory_space<vmem>>, vector<1x16x128xf32>,
    return
  }
  func.func @transform_0(%arg0: i32) -> (i32, i32, i32) {
    %c0_i32 = arith.constant 0 : i32
    %c0_i32_0 = arith.constant 0 : i32
    %c0_i32_1 = arith.constant 0 : i32
    return %arg0, %c0_i32, %c0_i32_0 : i32, i32, i32
  }
  func.func @transform_1(%arg0: i32) -> (i32, i32, i32) {
    %c0_i32 = arith.constant 0 : i32
    %c0_i32_0 = arith.constant 0 : i32
    %c0_i32_1 = arith.constant 0 : i32
    %c0_i32_2 = arith.constant 0 : i32
    return %c0_i32, %c0_i32_0, %c0_i32_1 : i32, i32, i32
  }
  func.func @transform_2(%arg0: i32) -> (i32, i32) {
    %c0_i32 = arith.constant 0 : i32
    %c0_i32_0 = arith.constant 0 : i32
    %c0_i32_1 = arith.constant 0 : i32
    return %c0_i32, %c0_i32_0 : i32, i32
  }
  func.func @transform_3(%arg0: i32) -> (i32, i32, i32) {
    %c0_i32 = arith.constant 0 : i32
    %c0_i32_0 = arith.constant 0 : i32
    %c0_i32_1 = arith.constant 0 : i32
    %c0_i32_2 = arith.constant 0 : i32
    return %c0_i32, %c0_i32_0, %c0_i32_1 : i32, i32, i32
  }
  func.func @transform_4(%arg0: i32) -> (i32, i32) {
    %c0_i32 = arith.constant 0 : i32
    %c0_i32_0 = arith.constant 0 : i32
    %c0_i32_1 = arith.constant 0 : i32
    return %c0_i32, %c0_i32_0 : i32, i32
  }
  func.func @transform_5(%arg0: i32) -> (i32, i32) {
    %c0_i32 = arith.constant 0 : i32
    %c0_i32_0 = arith.constant 0 : i32
    %c0_i32_1 = arith.constant 0 : i32
    return %c0_i32, %c0_i32_0 : i32, i32
  }
  func.func @transform_6(%arg0: i32) -> (i32, i32) {
    %c0_i32 = arith.constant 0 : i32
    %c0_i32_0 = arith.constant 0 : i32
    %c0_i32_1 = arith.constant 0 : i32
    return %c0_i32, %c0_i32_0 : i32, i32
  }
  func.func @transform_7(%arg0: i32) -> (i32, i32, i32) {
    %c0_i32 = arith.constant 0 : i32
    %c0_i32_0 = arith.constant 0 : i32
    %c0_i32_1 = arith.constant 0 : i32
    return %arg0, %c0_i32, %c0_i32_0 : i32, i32, i32
  }
}

</mosaic_0001>

<bundles_post_ra>
// kernel: tile.13
= control target key start
LH: loop header
LB: loop body
LE: loop exit
PB: predicated region body
PF: predicated region fallthrough
CT: control target
= control target key end

     0   :  { %s22_s0 = inlined_call_operand.vmem [shape: f32[2], index: 0, kind: input, shape index: {}]   ;;  %s23_s1 = inlined_call_operand.vmem [shape: f32[8,2], index: 1, kind: output, shape index: {}]  }
   0x1   :  { %v4_v0 = vld [vmem:[%s22_s0] ss:$0 sm:$0xff] }
   0x2   :  { %5 = vst [vmem:[%s23_s1] sm:$0xff] %v4_v0 }

// kernel: tile.0
= control target key start
LH: loop header
LB: loop body
LE: loop exit
PB: predicated region body
PF: predicated region fallthrough
CT: control target
= control target key end

     0   :  { %vm3_vm0 = vcmask 7168   ;;  %s13_s9 = smov 127   ;;  %s33_s0 = inlined_call_operand.vmem [shape: f32[8,2], index: 0, kind: input, shape index: {}]   ;;  %s34_s1 = inlined_call_operand.vmem [shape: f32[16,1], index: 1, kind: output, shape index: {}]  }
   0x1   :  { %v2_v0 = vld [vmem:[%s33_s0] sm:$0xff]  }
   0x2   :  { %4 = vst.msk [vmem:[%s34_s1] ss:$2 sm:$0xff] %vm3_vm0, %v2_v0   ;;  %6 = vrot.lane.b32.xlu0 %v2_v0, %s13_s9 }
  0x74   :  { %v7_v1 = vpop.permute.xlu0 %6  }
  0x75   :  { %11 = vst.msk [vmem:[%s34_s1 + $0x1] ss:$2 sm:$0xff] %vm3_vm0, %v7_v1  }

// kernel: simple_cnn_forward.1
= control target key start
LH: loop header
LB: loop body
LE: loop exit
PB: predicated region body
PF: predicated region fallthrough
CT: control target
= control target key end

     0   :  { %s3890_s13 = smov 18   ;;  %vm98_vm0 = vcmask 195584   ;;  %v3891_v12 = vmov 0.0   ;;  %s3892_s22 = smov 19   ;;  %v3899_v17 = vmov 0   ;;  %v53_v20 = vlaneseq  ;;  %s4696_s0 = inlined_call_operand.vmem [shape: f32[1,24,384], index: 0, kind: input, shape index: {}]   ;;  %s4697_s1 = inlined_call_operand.vmem [shape: f32[9,16,24], index: 1, kind: input, shape index: {}]   ;;  %s4698_s2 = inlined_call_operand.vmem [shape: f32[16,1], index: 2, kind: input, shape index: {}]   ;;  %s4699_s5 = inlined_call_operand.vmem [shape: f32[384,128], index: 5, kind: input, shape index: {}]   ;;  %s4700_s3 = inlined_call_operand.vmem [shape: f32[9,16,16], index: 3, kind: input, shape index: {}]   ;;  %s4701_s4 = inlined_call_operand.vmem [shape: f32[16,1], index: 4, kind: input, shape index: {}]   ;;  %s4702_s6 = inlined_call_operand.vmem [shape: f32[128,128], index: 6, kind: input, shape index: {}]   ;;  %s4703_s7 = inlined_call_operand.vmem [shape: f32[1,16,128], index: 7, kind: output, shape index: {}]  }
   0x1   :  { %v28_v0 = vld [vmem:[%s4696_s0 + $0x10] sm:$0xff]  ;;  %v31_v1 = vld [vmem:[%s4696_s0 + $0x28] sm:$0xff]  ;;  %v3955_v2 = vld [vmem:[%s4696_s0] sm:$0xff]  ;;  %169 = vmatprep.mubr.f32.mxu0 %v3891_v12  ;;  %s3894_s23 = smov 1   ;;  %s3895_s24 = smov 127   ;;  %3808 = vset.pattern.permute.xlu0 %v3899_v17  ;;  %vm2035_vm9 = vcmask 130048  }
   0x2   :  { %v3957_v3 = vpack.i.bf16 %v31_v1, %v28_v0  ;;  %v3962_v4 = vld [vmem:[%s4696_s0 + $0x18] sm:$0xff]  ;;  %v3967_v5 = vld [vmem:[%s4696_s0 + $0x8] sm:$0xff]  ;;  %v3976_v7 = vld [vmem:[%s4696_s0 + $0x20] sm:$0xff]  ;;  %v4023_v15 = vpack.c.bf16 %v31_v1, %v28_v0  ;;  %s3896_s25 = smov 111   ;;  %s3897_s26 = smov 110   ;;  %3809 = vset.pattern.permute.xlu1 %v3899_v17  ;;  %v4073_v22 = vand.u32 127, %v53_v20 }
   0x3   :  { %v3971_v6 = vpack.i.bf16 %v3962_v4, %v3955_v2  ;;  %v3983_v8 = vld [vmem:[%s4696_s0 + $0x30] sm:$0xff]  ;;  %v3693_v9 = vpack.i.bf16 %v3976_v7, %v3967_v5  ;;  %v3991_v10 = vld [vmem:[%s4696_s0 + $0x40] sm:$0xff]  ;;  %v3996_v11 = vld [vmem:[%s4696_s0 + $0x38] sm:$0xff]  ;;  %s3893_s0 = smov 17   ;;  %v3436_v14 = vpack.c.bf16 %v3976_v7, %v3967_v5  ;;  %v3438_v16 = vpack.c.bf16 %v3962_v4, %v3955_v2  ;;  %s3898_s27 = smov 109  }
   0x4   :  { %3699 = vrot.lane.b32.xlu1 %v3957_v3, %s3890_s13  ;;  %v4003_v13 = vld [vmem:[%s4697_s1 + $0x10] sm:$0xff]  ;;  %v1753_v18 = vld [vmem:[%s4698_s2 + $0x8] sm:$0xff]  ;;  %v1752_v19 = vld [vmem:[%s4698_s2] sm:$0xff]  ;;  %vm85_vm1 = vcmp.lt.s32.totalorder %v4073_v22, 18  ;;  %vm55_vm2 = vcmp.lt.s32.totalorder %v4073_v22, 19  ;;  %vm433_vm3 = vcmp.lt.s32.totalorder %v4073_v22, 17 }
   0x5   :  { %3689 = vrot.lane.b32.xlu0 %v3971_v6, %s3890_s13  ;;  %3196 = vmatprep.mubr.msk.f32.mxu1 %vm98_vm0, %v4003_v13  ;;  %v2950_v51 = vld [vmem:[%s4697_s1 + $0x18] sm:$0xff]  ;;  %v65_v53 = vld [vmem:[%s4697_s1] sm:$0xff]  ;;  %vm628_vm4 = vcmp.lt.s32.totalorder %v4073_v22, 1  ;;  %vm990_vm5 = vcmp.lt.s32.totalorder %v4073_v22, 127  ;;  %vm1185_vm6 = vcmp.lt.s32.totalorder %v4073_v22, 111  ;;  %vm1380_vm7 = vcmp.lt.s32.totalorder %v4073_v22, 110 }
   0x6   :  { %v2971_v5 = vld [vmem:[%s4697_s1 + $0x40] sm:$0xff]  ;;  %vm1575_vm8 = vcmp.lt.s32.totalorder %v4073_v22, 109  ;;  %v3001_v22 = vld [vmem:[%s4700_s3 + $0x10] sm:$0xff]  ;;  %s3903_s28 = smov 119   ;;  %s3904_s29 = smov 117  }
   0x7   :  { %s3905_s30 = smov 118  }
   0x8   :  { %71 = vrot.lane.b32.xlu1 %v3983_v8, %s3890_s13 }
   0x9   :  { %3694 = vrot.lane.b32.xlu0 %v3693_v9, %s3890_s13 }
   0xc   :  { %83 = vrot.lane.b32.xlu1 %v3991_v10, %s3890_s13 }
   0xd   :  { %77 = vrot.lane.b32.xlu0 %v3996_v11, %s3890_s13 }
  0x10   :  { %3709 = vrot.lane.b32.xlu1 %v3693_v9, %s3892_s22 }
  0x11   :  { %3704 = vrot.lane.b32.xlu0 %v3971_v6, %s3892_s22 }
  0x14   :  { %39 = vrot.lane.b32.xlu1 %v3983_v8, %s3892_s22 }
  0x15   :  { %3714 = vrot.lane.b32.xlu0 %v3957_v3, %s3892_s22 }
  0x18   :  { %51 = vrot.lane.b32.xlu1 %v3991_v10, %s3892_s22 }
  0x19   :  { %45 = vrot.lane.b32.xlu0 %v3996_v11, %s3892_s22 }
  0x1c   :  { %3724 = vrot.lane.b32.xlu1 %v3693_v9, %s3893_s0 }
  0x1d   :  { %3719 = vrot.lane.b32.xlu0 %v3971_v6, %s3893_s0 }
  0x20   :  { %419 = vrot.lane.b32.xlu1 %v3983_v8, %s3893_s0 }
  0x21   :  { %3729 = vrot.lane.b32.xlu0 %v3957_v3, %s3893_s0 }
  0x24   :  { %431 = vrot.lane.b32.xlu1 %v3991_v10, %s3893_s0 }
  0x25   :  { %425 = vrot.lane.b32.xlu0 %v3996_v11, %s3893_s0  ;;  %s3900_s0 = smov 11  }
  0x28   :  { %3739 = vrot.lane.b32.xlu1 %v3693_v9, %s3894_s23 }
  0x29   :  { %3734 = vrot.lane.b32.xlu0 %v3971_v6, %s3894_s23 }
  0x2c   :  { %614 = vrot.lane.b32.xlu1 %v3983_v8, %s3894_s23 }
  0x2d   :  { %3744 = vrot.lane.b32.xlu0 %v3957_v3, %s3894_s23 }
  0x30   :  { %626 = vrot.lane.b32.xlu1 %v3991_v10, %s3894_s23 }
  0x31   :  { %620 = vrot.lane.b32.xlu0 %v3996_v11, %s3894_s23 }
  0x34   :  { %3754 = vrot.lane.b32.xlu1 %v3693_v9, %s3895_s24 }
  0x35   :  { %3749 = vrot.lane.b32.xlu0 %v3971_v6, %s3895_s24 }
  0x38   :  { %976 = vrot.lane.b32.xlu1 %v3983_v8, %s3895_s24 }
  0x39   :  { %3759 = vrot.lane.b32.xlu0 %v3957_v3, %s3895_s24 }
  0x3c   :  { %988 = vrot.lane.b32.xlu1 %v3991_v10, %s3895_s24 }
  0x3d   :  { %982 = vrot.lane.b32.xlu0 %v3996_v11, %s3895_s24 }
  0x40   :  { %3769 = vrot.lane.b32.xlu1 %v3693_v9, %s3896_s25 }
  0x41   :  { %3764 = vrot.lane.b32.xlu0 %v3971_v6, %s3896_s25 }
  0x44   :  { %1171 = vrot.lane.b32.xlu1 %v3983_v8, %s3896_s25 }
  0x45   :  { %3774 = vrot.lane.b32.xlu0 %v3957_v3, %s3896_s25 }
  0x48   :  { %1183 = vrot.lane.b32.xlu1 %v3991_v10, %s3896_s25 }
  0x49   :  { %1177 = vrot.lane.b32.xlu0 %v3996_v11, %s3896_s25  ;;  %s3901_s25 = smov 10  }
  0x4c   :  { %3784 = vrot.lane.b32.xlu1 %v3693_v9, %s3897_s26 }
  0x4d   :  { %3779 = vrot.lane.b32.xlu0 %v3971_v6, %s3897_s26 }
  0x50   :  { %1366 = vrot.lane.b32.xlu1 %v3983_v8, %s3897_s26 }
  0x51   :  { %3789 = vrot.lane.b32.xlu0 %v3957_v3, %s3897_s26 }
  0x54   :  { %1378 = vrot.lane.b32.xlu1 %v3991_v10, %s3897_s26 }
  0x55   :  { %1372 = vrot.lane.b32.xlu0 %v3996_v11, %s3897_s26 }
  0x58   :  { %3799 = vrot.lane.b32.xlu1 %v3693_v9, %s3898_s27 }
  0x59   :  { %3794 = vrot.lane.b32.xlu0 %v3971_v6, %s3898_s27 }
  0x5c   :  { %1561 = vrot.lane.b32.xlu1 %v3983_v8, %s3898_s27 }
  0x5d   :  { %3804 = vrot.lane.b32.xlu0 %v3957_v3, %s3898_s27 }
  0x60   :  { %1573 = vrot.lane.b32.xlu1 %v3991_v10, %s3898_s27 }
  0x61   :  { %1567 = vrot.lane.b32.xlu0 %v3996_v11, %s3898_s27  ;;  %s3902_s27 = smov 9  }
  0x64   :  { %1761 = vperm.xlu1 %3809, %v1753_v18  }
  0x65   :  { %1756 = vperm.xlu0 %3808, %v1752_v19  }
  0x76   :  { %v3700_v21 = vpop.permute.xlu1 %3699 }
  0x77   :  { %v3690_v23 = vpop.permute.xlu0 %3689  ;;  %v3702_v24 = vunpack.i.h.bf16 %v3700_v21  ;;  %v3701_v25 = vunpack.i.l.bf16 %v3700_v21 }
  0x78   :  { %v3692_v26 = vunpack.i.h.bf16 %v3690_v23  ;;  %v3691_v27 = vunpack.i.l.bf16 %v3690_v23 }
  0x7a   :  { %v72_v28 = vpop.permute.xlu1 %71  ;;  %v92_v32 = vsel %vm85_vm1, %v3701_v25, %v3691_v27  ;;  %v93_v33 = vsel %vm85_vm1, %v3702_v24, %v3692_v26 }
  0x7b   :  { %v3695_v29 = vpop.permute.xlu0 %3694  ;;  %v3406_v42 = vpack.c.bf16 %v93_v33, %v92_v32 }
  0x7c   :  { %v3697_v30 = vunpack.i.h.bf16 %v3695_v29  ;;  %v3696_v31 = vunpack.i.l.bf16 %v3695_v29 }
  0x7e   :  { %v84_v34 = vpop.permute.xlu1 %83  ;;  %v89_v35 = vsel %vm85_vm1, %v3691_v27, %v3696_v31  ;;  %v90_v36 = vsel %vm85_vm1, %v3692_v26, %v3697_v30  ;;  %v86_v37 = vsel %vm85_vm1, %v3696_v31, %v3701_v25  ;;  %v87_v38 = vsel %vm85_vm1, %v3697_v30, %v3702_v24  ;;  %v66_v26 = vld [vmem:[%s4697_s1 + $0x8] sm:$0xff]  ;;  %v2959_v27 = vld [vmem:[%s4697_s1 + $0x20] sm:$0xff] }
  0x7f   :  { %v78_v39 = vpop.permute.xlu0 %77  ;;  %v3404_v40 = vpack.c.bf16 %v90_v36, %v89_v35  ;;  %v3408_v41 = vpack.c.bf16 %v87_v38, %v86_v37  ;;  %v94_v52 = vsel %vm85_vm1, %v84_v34, %v72_v28 }
  0x80   :  { %v91_v44 = vsel %vm85_vm1, %v72_v28, %v78_v39  ;;  %v88_v45 = vsel %vm85_vm1, %v78_v39, %v84_v34 }
  0x81   :  { %3405 = vmatprep.subr.bf16.mxu0 %v3404_v40  ;;  %3409 = vmatprep.subr.bf16.mxu1 %v3408_v41 }
  0x82   :  { %3407 = vmatpush1.bf16.msra.mxu0 %v3406_v42  ;;  %3411 = vmatpush3.bf16.msra.mxu1 %v3408_v41  ;;  %v3710_v43 = vpop.permute.xlu1 %3709 }
  0x83   :  { %v3712_v46 = vunpack.i.h.bf16 %v3710_v43  ;;  %v3711_v47 = vunpack.i.l.bf16 %v3710_v43  ;;  %v3705_v48 = vpop.permute.xlu0 %3704  ;;  %109 = vmatprep.subr.mxu0 %v91_v44  ;;  %3194 = vmatprep.subr.mxu1 %v88_v45 }
  0x84   :  { %v3707_v49 = vunpack.i.h.bf16 %v3705_v48  ;;  %v3706_v50 = vunpack.i.l.bf16 %v3705_v48 }
  0x86   :  { %110 = vmatpush1.msra.mxu0 %v94_v52  ;;  %3195 = vmatpush3.msra.mxu1 %v88_v45  ;;  %v40_v54 = vpop.permute.xlu1 %39  ;;  %v59_v55 = vsel %vm55_vm2, %v3706_v50, %v3711_v47  ;;  %v60_v56 = vsel %vm55_vm2, %v3707_v49, %v3712_v46  ;;  %v2960_v52 = vld [vmem:[%s4697_s1 + $0x28] sm:$0xff] }
  0x87   :  { %v3715_v57 = vpop.permute.xlu0 %3714  ;;  %v3412_v58 = vpack.c.bf16 %v60_v56, %v59_v55  ;;  %2951 = vmatmul.mubr.msk.f32.vlgmr.msra.gmra.mrb[0].mxu0 %vm98_vm0, %v4003_v13  ;;  %3197 = vmatmul.mubr.msk.f32.vlgmr.msra.gmra.mrb[0].mxu1 %vm98_vm0, %v2950_v51 }
  0x88   :  { %v3717_v59 = vunpack.i.h.bf16 %v3715_v57  ;;  %v3716_v60 = vunpack.i.l.bf16 %v3715_v57  ;;  %175 = vmatprep.mubr.f32.mxu0 %v3891_v12  ;;  %3205 = vmatprep.mubr.msk.f32.mxu1 %vm98_vm0, %v65_v53 }
  0x89   :  { %3413 = vmatprep.subr.bf16.mxu0 %v3412_v58 }
  0x8a   :  { %v62_v61 = vsel %vm55_vm2, %v3716_v60, %v3706_v50  ;;  %v63_v62 = vsel %vm55_vm2, %v3717_v59, %v3707_v49  ;;  %v52_v63 = vpop.permute.xlu1 %51  ;;  %v56_v0 = vsel %vm55_vm2, %v3711_v47, %v3716_v60  ;;  %v57_v1 = vsel %vm55_vm2, %v3712_v46, %v3717_v59 }
  0x8b   :  { %v3414_v3 = vpack.c.bf16 %v63_v62, %v62_v61  ;;  %v46_v6 = vpop.permute.xlu0 %45  ;;  %v3416_v9 = vpack.c.bf16 %v57_v1, %v56_v0  ;;  %2952 = vmatmul.mubr.msk.f32.gmra.mrb[2].mxu0 %vm98_vm0, %v2950_v51  ;;  %v64_v23 = vsel %vm55_vm2, %v52_v63, %v40_v54 }
  0x8c   :  { %v61_v13 = vsel %vm55_vm2, %v40_v54, %v46_v6  ;;  %327 = vmatprep.mubr.f32.mxu0 %v3891_v12  ;;  %v58_v18 = vsel %vm55_vm2, %v46_v6, %v52_v63 }
  0x8d   :  { %3415 = vmatpush1.bf16.msra.mxu0 %v3414_v3  ;;  %3417 = vmatprep.subr.bf16.mxu1 %v3416_v9 }
  0x8e   :  { %267 = vmatprep.subr.mxu0 %v61_v13  ;;  %3419 = vmatpush3.bf16.msra.mxu1 %v3416_v9  ;;  %v3725_v17 = vpop.permute.xlu1 %3724 }
  0x8f   :  { %v3727_v19 = vunpack.i.h.bf16 %v3725_v17  ;;  %v3726_v20 = vunpack.i.l.bf16 %v3725_v17  ;;  %v3720_v21 = vpop.permute.xlu0 %3719  ;;  %3203 = vmatprep.subr.mxu1 %v58_v18 }
  0x90   :  { %v3722_v24 = vunpack.i.h.bf16 %v3720_v21  ;;  %v3721_v25 = vunpack.i.l.bf16 %v3720_v21  ;;  %v2966_v21 = vld [vmem:[%s4697_s1 + $0x38] sm:$0xff] }
  0x91   :  { %268 = vmatpush1.msra.mxu0 %v64_v23 }
  0x92   :  { %3204 = vmatpush3.msra.mxu1 %v58_v18  ;;  %v420_v28 = vpop.permute.xlu1 %419  ;;  %v437_v29 = vsel %vm433_vm3, %v3721_v25, %v3726_v20  ;;  %v438_v30 = vsel %vm433_vm3, %v3722_v24, %v3727_v19  ;;  %2955 = vmatmul.mubr.msk.f32.vlgmr.msra.gmra.mrb[0].mxu0 %vm98_vm0, %v65_v53  ;;  %v2965_v53 = vld [vmem:[%s4697_s1 + $0x30] sm:$0xff] }
  0x93   :  { %v3730_v31 = vpop.permute.xlu0 %3729  ;;  %v3420_v32 = vpack.c.bf16 %v438_v30, %v437_v29  ;;  %3206 = vmatmul.mubr.msk.f32.vlgmr.msra.gmra.mrb[0].mxu1 %vm98_vm0, %v66_v26  ;;  %333 = vmatprep.mubr.f32.mxu0 %v3891_v12 }
  0x94   :  { %v3732_v33 = vunpack.i.h.bf16 %v3730_v31  ;;  %v3731_v34 = vunpack.i.l.bf16 %v3730_v31  ;;  %3214 = vmatprep.mubr.msk.f32.mxu1 %vm98_vm0, %v2959_v27 }
  0x95   :  { %3421 = vmatprep.subr.bf16.mxu0 %v3420_v32 }
  0x96   :  { %v440_v35 = vsel %vm433_vm3, %v3731_v34, %v3721_v25  ;;  %v441_v36 = vsel %vm433_vm3, %v3732_v33, %v3722_v24  ;;  %v432_v37 = vpop.permute.xlu1 %431  ;;  %v434_v38 = vsel %vm433_vm3, %v3726_v20, %v3731_v34  ;;  %v435_v39 = vsel %vm433_vm3, %v3727_v19, %v3732_v33  ;;  %2956 = vmatmul.mubr.msk.f32.gmra.mrb[2].mxu0 %vm98_vm0, %v66_v26  ;;  %v2972_v34 = vld [vmem:[%s4697_s1 + $0x48] sm:$0xff] }
  0x97   :  { %v3422_v40 = vpack.c.bf16 %v441_v36, %v440_v35  ;;  %v426_v41 = vpop.permute.xlu0 %425  ;;  %v3424_v42 = vpack.c.bf16 %v435_v39, %v434_v38  ;;  %516 = vmatprep.mubr.f32.mxu0 %v3891_v12  ;;  %v442_v49 = vsel %vm433_vm3, %v432_v37, %v420_v28  ;;  %v2977_v38 = vld [vmem:[%s4697_s1 + $0x50] sm:$0xff] }
  0x98   :  { %v439_v43 = vsel %vm433_vm3, %v420_v28, %v426_v41  ;;  %v436_v45 = vsel %vm433_vm3, %v426_v41, %v432_v37 }
  0x99   :  { %3423 = vmatpush1.bf16.msra.mxu0 %v3422_v40  ;;  %3425 = vmatprep.subr.bf16.mxu1 %v3424_v42 }
  0x9a   :  { %456 = vmatprep.subr.mxu0 %v439_v43  ;;  %3427 = vmatpush3.bf16.msra.mxu1 %v3424_v42  ;;  %v3740_v44 = vpop.permute.xlu1 %3739 }
  0x9b   :  { %v3742_v46 = vunpack.i.h.bf16 %v3740_v44  ;;  %v3741_v47 = vunpack.i.l.bf16 %v3740_v44  ;;  %v3735_v48 = vpop.permute.xlu0 %3734  ;;  %3212 = vmatprep.subr.mxu1 %v436_v45 }
  0x9c   :  { %v3737_v50 = vunpack.i.h.bf16 %v3735_v48  ;;  %v3736_v51 = vunpack.i.l.bf16 %v3735_v48  ;;  %v2978_v48 = vld [vmem:[%s4697_s1 + $0x58] sm:$0xff] }
  0x9d   :  { %457 = vmatpush1.msra.mxu0 %v442_v49 }
  0x9e   :  { %3213 = vmatpush3.msra.mxu1 %v436_v45  ;;  %v615_v54 = vpop.permute.xlu1 %614  ;;  %v632_v55 = vsel %vm628_vm4, %v3736_v51, %v3741_v47  ;;  %v633_v56 = vsel %vm628_vm4, %v3737_v50, %v3742_v46  ;;  %2961 = vmatmul.mubr.msk.f32.vlgmr.msra.gmra.mrb[0].mxu0 %vm98_vm0, %v2959_v27 }
  0x9f   :  { %v3745_v57 = vpop.permute.xlu0 %3744  ;;  %v3428_v58 = vpack.c.bf16 %v633_v56, %v632_v55  ;;  %3215 = vmatmul.mubr.msk.f32.vlgmr.msra.gmra.mrb[0].mxu1 %vm98_vm0, %v2960_v52  ;;  %522 = vmatprep.mubr.f32.mxu0 %v3891_v12 }
  0xa0   :  { %v3747_v59 = vunpack.i.h.bf16 %v3745_v57  ;;  %v3746_v60 = vunpack.i.l.bf16 %v3745_v57  ;;  %3223 = vmatprep.mubr.msk.f32.mxu1 %vm98_vm0, %v2965_v53 }
  0xa1   :  { %3429 = vmatprep.subr.bf16.mxu0 %v3428_v58 }
  0xa2   :  { %v635_v61 = vsel %vm628_vm4, %v3746_v60, %v3736_v51  ;;  %v636_v62 = vsel %vm628_vm4, %v3747_v59, %v3737_v50  ;;  %v627_v63 = vpop.permute.xlu1 %626  ;;  %v629_v0 = vsel %vm628_vm4, %v3741_v47, %v3746_v60  ;;  %v630_v1 = vsel %vm628_vm4, %v3742_v46, %v3747_v59  ;;  %2962 = vmatmul.mubr.msk.f32.gmra.mrb[2].mxu0 %vm98_vm0, %v2960_v52  ;;  %v2983_v51 = vld [vmem:[%s4697_s1 + $0x60] sm:$0xff] }
  0xa3   :  { %v3430_v3 = vpack.c.bf16 %v636_v62, %v635_v61  ;;  %v621_v6 = vpop.permute.xlu0 %620  ;;  %v3432_v9 = vpack.c.bf16 %v630_v1, %v629_v0  ;;  %711 = vmatprep.mubr.f32.mxu0 %v3891_v12  ;;  %v637_v20 = vsel %vm628_vm4, %v627_v63, %v615_v54 }
  0xa4   :  { %v634_v13 = vsel %vm628_vm4, %v615_v54, %v621_v6  ;;  %v631_v18 = vsel %vm628_vm4, %v621_v6, %v627_v63 }
  0xa5   :  { %3431 = vmatpush1.bf16.msra.mxu0 %v3430_v3  ;;  %3433 = vmatprep.subr.bf16.mxu1 %v3432_v9  ;;  %v2984_v3 = vld [vmem:[%s4697_s1 + $0x68] sm:$0xff] }
  0xa6   :  { %651 = vmatprep.subr.mxu0 %v634_v13  ;;  %3435 = vmatpush3.bf16.msra.mxu1 %v3432_v9  ;;  %v3755_v17 = vpop.permute.xlu1 %3754 }
  0xa7   :  { %v3750_v19 = vpop.permute.xlu0 %3749  ;;  %3221 = vmatprep.subr.mxu1 %v631_v18  ;;  %v3757_v23 = vunpack.i.h.bf16 %v3755_v17  ;;  %v3756_v24 = vunpack.i.l.bf16 %v3755_v17 }
  0xa8   :  { %v3752_v25 = vunpack.i.h.bf16 %v3750_v19  ;;  %v3751_v26 = vunpack.i.l.bf16 %v3750_v19 }
  0xa9   :  { %652 = vmatpush1.msra.mxu0 %v637_v20 }
  0xaa   :  { %2967 = vmatmul.mubr.msk.f32.vlgmr.msra.gmra.mrb[0].mxu0 %vm98_vm0, %v2965_v53  ;;  %3222 = vmatpush3.msra.mxu1 %v631_v18  ;;  %v977_v27 = vpop.permute.xlu1 %976  ;;  %v995_v31 = vsel %vm990_vm5, %v3752_v25, %v3757_v23  ;;  %v994_v32 = vsel %vm990_vm5, %v3751_v26, %v3756_v24  ;;  %v2989_v18 = vld [vmem:[%s4697_s1 + $0x70] sm:$0xff] }
  0xab   :  { %v3760_v28 = vpop.permute.xlu0 %3759  ;;  %3224 = vmatmul.mubr.msk.f32.vlgmr.msra.gmra.mrb[0].mxu1 %vm98_vm0, %v2966_v21  ;;  %3437 = vmatprep.subr.bf16.mxu0 %v3436_v14  ;;  %v3446_v35 = vpack.c.bf16 %v995_v31, %v994_v32 }
  0xac   :  { %v3762_v29 = vunpack.i.h.bf16 %v3760_v28  ;;  %v3761_v30 = vunpack.i.l.bf16 %v3760_v28  ;;  %3441 = vmatprep.subr.bf16.mxu1 %v4023_v15  ;;  %3439 = vmatpush1.bf16.msra.mxu0 %v3438_v16 }
  0xad   :  { %3443 = vmatpush3.bf16.msra.mxu1 %v4023_v15  ;;  %717 = vmatprep.mubr.f32.mxu0 %v3891_v12 }
  0xae   :  { %2968 = vmatmul.mubr.msk.f32.gmra.mrb[2].mxu0 %vm98_vm0, %v2966_v21  ;;  %v989_v7 = vpop.permute.xlu1 %988  ;;  %818 = vmatprep.subr.mxu0 %v3996_v11  ;;  %v991_v2 = vsel %vm990_vm5, %v3756_v24, %v3761_v30  ;;  %v992_v4 = vsel %vm990_vm5, %v3757_v23, %v3762_v29  ;;  %v997_v14 = vsel %vm990_vm5, %v3761_v30, %v3751_v26 }
  0xaf   :  { %v983_v15 = vpop.permute.xlu0 %982  ;;  %3230 = vmatprep.subr.mxu1 %v3991_v10  ;;  %878 = vmatprep.mubr.f32.mxu0 %v3891_v12  ;;  %v3444_v16 = vpack.c.bf16 %v992_v4, %v991_v2  ;;  %v998_v33 = vsel %vm990_vm5, %v3762_v29, %v3752_v25 }
  0xb0   :  { %819 = vmatpush1.msra.mxu0 %v3983_v8  ;;  %v3448_v11 = vpack.c.bf16 %v998_v33, %v997_v14  ;;  %3232 = vmatprep.mubr.msk.f32.mxu1 %vm98_vm0, %v2971_v5  ;;  %v993_v8 = vsel %vm990_vm5, %v983_v15, %v989_v7  ;;  %v996_v43 = vsel %vm990_vm5, %v977_v27, %v983_v15  ;;  %v2990_v33 = vld [vmem:[%s4697_s1 + $0x78] sm:$0xff] }
  0xb1   :  { %3231 = vmatpush3.msra.mxu1 %v3991_v10  ;;  %3445 = vmatprep.subr.bf16.mxu0 %v3444_v16  ;;  %v999_v10 = vsel %vm990_vm5, %v989_v7, %v977_v27 }
  0xb2   :  { %3449 = vmatprep.subr.bf16.mxu1 %v3448_v11  ;;  %2973 = vmatmul.mubr.msk.f32.vlgmr.msra.gmra.mrb[0].mxu0 %vm98_vm0, %v2971_v5  ;;  %v3770_v36 = vpop.permute.xlu1 %3769 }
  0xb3   :  { %3447 = vmatpush1.bf16.msra.mxu0 %v3446_v35  ;;  %v3765_v37 = vpop.permute.xlu0 %3764  ;;  %3233 = vmatmul.mubr.msk.f32.vlgmr.msra.gmra.mrb[0].mxu1 %vm98_vm0, %v2972_v34  ;;  %v3772_v39 = vunpack.i.h.bf16 %v3770_v36  ;;  %v3771_v40 = vunpack.i.l.bf16 %v3770_v36 }
  0xb4   :  { %1013 = vmatprep.subr.mxu0 %v993_v8  ;;  %3451 = vmatpush3.bf16.msra.mxu1 %v3448_v11  ;;  %v3767_v41 = vunpack.i.h.bf16 %v3765_v37  ;;  %v3766_v42 = vunpack.i.l.bf16 %v3765_v37  ;;  %v2995_v37 = vld [vmem:[%s4697_s1 + $0x80] sm:$0xff] }
  0xb5   :  { %3239 = vmatprep.subr.mxu1 %v999_v10  ;;  %884 = vmatprep.mubr.f32.mxu0 %v3891_v12 }
  0xb6   :  { %v1172_v44 = vpop.permute.xlu1 %1171  ;;  %2974 = vmatmul.mubr.msk.f32.gmra.mrb[2].mxu0 %vm98_vm0, %v2972_v34  ;;  %3241 = vmatprep.mubr.msk.f32.mxu1 %vm98_vm0, %v2977_v38  ;;  %v1190_v49 = vsel %vm1185_vm6, %v3767_v41, %v3772_v39  ;;  %v1189_v50 = vsel %vm1185_vm6, %v3766_v42, %v3771_v40 }
  0xb7   :  { %1014 = vmatpush1.msra.mxu0 %v996_v43  ;;  %v3775_v45 = vpop.permute.xlu0 %3774  ;;  %1073 = vmatprep.mubr.f32.mxu0 %v3891_v12  ;;  %v3454_v60 = vpack.c.bf16 %v1190_v49, %v1189_v50 }
  0xb8   :  { %v3777_v46 = vunpack.i.h.bf16 %v3775_v45  ;;  %v3776_v47 = vunpack.i.l.bf16 %v3775_v45  ;;  %3240 = vmatpush3.msra.mxu1 %v999_v10 }
  0xba   :  { %v1184_v52 = vpop.permute.xlu1 %1183  ;;  %v1186_v53 = vsel %vm1185_vm6, %v3771_v40, %v3776_v47  ;;  %v1187_v54 = vsel %vm1185_vm6, %v3772_v39, %v3777_v46  ;;  %v1192_v55 = vsel %vm1185_vm6, %v3776_v47, %v3766_v42  ;;  %v1193_v56 = vsel %vm1185_vm6, %v3777_v46, %v3767_v41  ;;  %2979 = vmatmul.mubr.msk.f32.vlgmr.msra.gmra.mrb[0].mxu0 %vm98_vm0, %v2977_v38 }
  0xbb   :  { %v1178_v57 = vpop.permute.xlu0 %1177  ;;  %v3452_v58 = vpack.c.bf16 %v1187_v54, %v1186_v53  ;;  %v3456_v59 = vpack.c.bf16 %v1193_v56, %v1192_v55  ;;  %3242 = vmatmul.mubr.msk.f32.vlgmr.msra.gmra.mrb[0].mxu1 %vm98_vm0, %v2978_v48  ;;  %1079 = vmatprep.mubr.f32.mxu0 %v3891_v12  ;;  %v1194_v63 = vsel %vm1185_vm6, %v1184_v52, %v1172_v44  ;;  %v2996_v53 = vld [vmem:[%s4697_s1 + $0x88] sm:$0xff] }
  0xbc   :  { %3250 = vmatprep.mubr.msk.f32.mxu1 %vm98_vm0, %v2983_v51  ;;  %v1188_v62 = vsel %vm1185_vm6, %v1178_v57, %v1184_v52  ;;  %v1191_v1 = vsel %vm1185_vm6, %v1172_v44, %v1178_v57 }
  0xbd   :  { %3453 = vmatprep.subr.bf16.mxu0 %v3452_v58  ;;  %3457 = vmatprep.subr.bf16.mxu1 %v3456_v59 }
  0xbe   :  { %3455 = vmatpush1.bf16.msra.mxu0 %v3454_v60  ;;  %3459 = vmatpush3.bf16.msra.mxu1 %v3456_v59  ;;  %v3785_v61 = vpop.permute.xlu1 %3784 }
  0xbf   :  { %v3780_v0 = vpop.permute.xlu0 %3779  ;;  %1208 = vmatprep.subr.mxu0 %v1188_v62  ;;  %3248 = vmatprep.subr.mxu1 %v1194_v63  ;;  %v3787_v6 = vunpack.i.h.bf16 %v3785_v61  ;;  %v3786_v9 = vunpack.i.l.bf16 %v3785_v61 }
  0xc0   :  { %2980 = vmatmul.mubr.msk.f32.gmra.mrb[2].mxu0 %vm98_vm0, %v2978_v48  ;;  %v3782_v13 = vunpack.i.h.bf16 %v3780_v0  ;;  %v3781_v17 = vunpack.i.l.bf16 %v3780_v0 }
  0xc1   :  { %1268 = vmatprep.mubr.f32.mxu0 %v3891_v12 }
  0xc2   :  { %1209 = vmatpush1.msra.mxu0 %v1191_v1  ;;  %3249 = vmatpush3.msra.mxu1 %v1194_v63  ;;  %v1367_v19 = vpop.permute.xlu1 %1366  ;;  %v1385_v24 = vsel %vm1380_vm7, %v3782_v13, %v3787_v6  ;;  %v1384_v25 = vsel %vm1380_vm7, %v3781_v17, %v3786_v9 }
  0xc3   :  { %v3790_v20 = vpop.permute.xlu0 %3789  ;;  %3251 = vmatmul.mubr.msk.f32.vlgmr.msra.gmra.mrb[0].mxu1 %vm98_vm0, %v2984_v3  ;;  %v3462_v7 = vpack.c.bf16 %v1385_v24, %v1384_v25  ;;  %v1840_v25 = vld [vmem:[%s4699_s5 + $0x80] sm:$0xff] }
  0xc4   :  { %v3792_v21 = vunpack.i.h.bf16 %v3790_v20  ;;  %v3791_v23 = vunpack.i.l.bf16 %v3790_v20  ;;  %2985 = vmatmul.mubr.msk.f32.vlgmr.msra.gmra.mrb[0].mxu0 %vm98_vm0, %v2983_v51  ;;  %3259 = vmatprep.mubr.msk.f32.mxu1 %vm98_vm0, %v2989_v18 }
  0xc5   :  { %1274 = vmatprep.mubr.f32.mxu0 %v3891_v12 }
  0xc6   :  { %v1379_v26 = vpop.permute.xlu1 %1378  ;;  %v1381_v27 = vsel %vm1380_vm7, %v3786_v9, %v3791_v23  ;;  %v1382_v28 = vsel %vm1380_vm7, %v3787_v6, %v3792_v21  ;;  %v1387_v29 = vsel %vm1380_vm7, %v3791_v23, %v3781_v17  ;;  %v1388_v30 = vsel %vm1380_vm7, %v3792_v21, %v3782_v13 }
  0xc7   :  { %v1373_v31 = vpop.permute.xlu0 %1372  ;;  %v3460_v32 = vpack.c.bf16 %v1382_v28, %v1381_v27  ;;  %v3464_v5 = vpack.c.bf16 %v1388_v30, %v1387_v29  ;;  %v1389_v14 = vsel %vm1380_vm7, %v1379_v26, %v1367_v19  ;;  %v1824_v27 = vld [vmem:[%s4699_s5] sm:$0xff]  ;;  %v1825_v29 = vld [vmem:[%s4699_s5 + $0x8] sm:$0xff] }
  0xc8   :  { %2986 = vmatmul.mubr.msk.f32.gmra.mrb[2].mxu0 %vm98_vm0, %v2984_v3  ;;  %v1383_v4 = vsel %vm1380_vm7, %v1373_v31, %v1379_v26  ;;  %v1386_v16 = vsel %vm1380_vm7, %v1367_v19, %v1373_v31  ;;  %v1841_v26 = vld [vmem:[%s4699_s5 + $0x88] sm:$0xff]  ;;  %v1856_v30 = vld [vmem:[%s4699_s5 + $0x100] sm:$0xff] }
  0xc9   :  { %3461 = vmatprep.subr.bf16.mxu0 %v3460_v32  ;;  %3465 = vmatprep.subr.bf16.mxu1 %v3464_v5  ;;  %v3476_v28 = vpack.c.bf16 %v1841_v26, %v1840_v25  ;;  %v1857_v31 = vld [vmem:[%s4699_s5 + $0x108] sm:$0xff]  ;;  %v3478_v32 = vpack.c.bf16 %v1825_v29, %v1824_v27  ;;  %v1835_v25 = vld [vmem:[%s4699_s5 + $0x58] sm:$0xff]  ;;  %v1852_v27 = vld [vmem:[%s4699_s5 + $0xe0] sm:$0xff] }
  0xca   :  { %3463 = vmatpush1.bf16.msra.mxu0 %v3462_v7  ;;  %3467 = vmatpush3.bf16.msra.mxu1 %v3464_v5  ;;  %v3800_v2 = vpop.permute.xlu1 %3799  ;;  %v3508_v5 = vpack.c.bf16 %v1857_v31, %v1856_v30  ;;  %v1842_v7 = vld [vmem:[%s4699_s5 + $0x90] sm:$0xff]  ;;  %v1836_v31 = vld [vmem:[%s4699_s5 + $0x60] sm:$0xff] }
  0xcb   :  { %v3795_v15 = vpop.permute.xlu0 %3794  ;;  %1403 = vmatprep.subr.mxu0 %v1383_v4  ;;  %3257 = vmatprep.subr.mxu1 %v1389_v14  ;;  %v3802_v11 = vunpack.i.h.bf16 %v3800_v2  ;;  %v3801_v34 = vunpack.i.l.bf16 %v3800_v2  ;;  %v1843_v2 = vld [vmem:[%s4699_s5 + $0x98] sm:$0xff]  ;;  %v1826_v4 = vld [vmem:[%s4699_s5 + $0x10] sm:$0xff] }
  0xcc   :  { %1463 = vmatprep.mubr.f32.mxu0 %v3891_v12  ;;  %v3797_v35 = vunpack.i.h.bf16 %v3795_v15  ;;  %v3796_v36 = vunpack.i.l.bf16 %v3795_v15  ;;  %v1827_v15 = vld [vmem:[%s4699_s5 + $0x18] sm:$0xff] }
  0xce   :  { %1404 = vmatpush1.msra.mxu0 %v1386_v16  ;;  %3258 = vmatpush3.msra.mxu1 %v1389_v14  ;;  %v1562_v8 = vpop.permute.xlu1 %1561  ;;  %v1580_v40 = vsel %vm1575_vm8, %v3797_v35, %v3802_v11  ;;  %v1579_v41 = vsel %vm1575_vm8, %v3796_v36, %v3801_v34  ;;  %v3480_v14 = vpack.c.bf16 %v1843_v2, %v1842_v7  ;;  %v1858_v16 = vld [vmem:[%s4699_s5 + $0x110] sm:$0xff]  ;;  %v1868_v7 = vld [vmem:[%s4699_s5 + $0x160] sm:$0xff]  ;;  %v1869_v2 = vld [vmem:[%s4699_s5 + $0x168] sm:$0xff] }
  0xcf   :  { %v3805_v38 = vpop.permute.xlu0 %3804  ;;  %2991 = vmatmul.mubr.msk.f32.vlgmr.msra.gmra.mrb[0].mxu0 %vm98_vm0, %v2989_v18  ;;  %3260 = vmatmul.mubr.msk.f32.vlgmr.msra.gmra.mrb[0].mxu1 %vm98_vm0, %v2990_v33  ;;  %v3470_v50 = vpack.c.bf16 %v1580_v40, %v1579_v41  ;;  %v1846_v41 = vld [vmem:[%s4699_s5 + $0xb0] sm:$0xff] }
  0xd0   :  { %v3807_v10 = vunpack.i.h.bf16 %v3805_v38  ;;  %v3806_v39 = vunpack.i.l.bf16 %v3805_v38  ;;  %1469 = vmatprep.mubr.f32.mxu0 %v3891_v12  ;;  %3268 = vmatprep.mubr.msk.f32.mxu1 %vm98_vm0, %v2995_v37  ;;  %v1829_v38 = vld [vmem:[%s4699_s5 + $0x28] sm:$0xff] }
  0xd2   :  { %v1576_v42 = vsel %vm1575_vm8, %v3801_v34, %v3806_v39  ;;  %v1577_v43 = vsel %vm1575_vm8, %v3802_v11, %v3807_v10  ;;  %v1582_v44 = vsel %vm1575_vm8, %v3806_v39, %v3796_v36  ;;  %v1583_v45 = vsel %vm1575_vm8, %v3807_v10, %v3797_v35  ;;  %v1574_v46 = vpop.permute.xlu1 %1573  ;;  %v1844_v35 = vld [vmem:[%s4699_s5 + $0xa0] sm:$0xff]  ;;  %v1845_v36 = vld [vmem:[%s4699_s5 + $0xa8] sm:$0xff] }
  0xd3   :  { %v1568_v47 = vpop.permute.xlu0 %1567  ;;  %v3468_v48 = vpack.c.bf16 %v1577_v43, %v1576_v42  ;;  %v3472_v49 = vpack.c.bf16 %v1583_v45, %v1582_v44  ;;  %2992 = vmatmul.mubr.msk.f32.gmra.mrb[2].mxu0 %vm98_vm0, %v2990_v33  ;;  %v1584_v52 = vsel %vm1575_vm8, %v1574_v46, %v1562_v8  ;;  %v1859_v33 = vld [vmem:[%s4699_s5 + $0x118] sm:$0xff]  ;;  %v3482_v11 = vpack.c.bf16 %v1827_v15, %v1826_v4  ;;  %v1860_v10 = vld [vmem:[%s4699_s5 + $0x120] sm:$0xff]  ;;  %v1861_v39 = vld [vmem:[%s4699_s5 + $0x128] sm:$0xff] }
  0xd4   :  { %v1578_v51 = vsel %vm1575_vm8, %v1568_v47, %v1574_v46  ;;  %1658 = vmatprep.mubr.f32.mxu0 %v3891_v12  ;;  %v1581_v54 = vsel %vm1575_vm8, %v1562_v8, %v1568_v47  ;;  %v3512_v34 = vpack.c.bf16 %v1859_v33, %v1858_v16  ;;  %v3484_v8 = vpack.c.bf16 %v1845_v36, %v1844_v35  ;;  %v1847_v42 = vld [vmem:[%s4699_s5 + $0xb8] sm:$0xff]  ;;  %v1862_v43 = vld [vmem:[%s4699_s5 + $0x130] sm:$0xff] }
  0xd5   :  { %3469 = vmatprep.subr.bf16.mxu0 %v3468_v48  ;;  %3473 = vmatprep.subr.bf16.mxu1 %v3472_v49  ;;  %v3516_v40 = vpack.c.bf16 %v1861_v39, %v1860_v10  ;;  %v1863_v44 = vld [vmem:[%s4699_s5 + $0x138] sm:$0xff]  ;;  %v3488_v46 = vpack.c.bf16 %v1847_v42, %v1846_v41  ;;  %v1830_v47 = vld [vmem:[%s4699_s5 + $0x30] sm:$0xff]  ;;  %v3532_v4 = vpack.c.bf16 %v1869_v2, %v1868_v7 }
  0xd6   :  { %3471 = vmatpush1.bf16.msra.mxu0 %v3470_v50  ;;  %3475 = vmatpush3.bf16.msra.mxu1 %v3472_v49  ;;  %v1831_v48 = vld [vmem:[%s4699_s5 + $0x38] sm:$0xff]  ;;  %v3520_v49 = vpack.c.bf16 %v1863_v44, %v1862_v43  ;;  %v1848_v50 = vld [vmem:[%s4699_s5 + $0xc0] sm:$0xff]  ;;  %v1838_v33 = vld [vmem:[%s4699_s5 + $0x70] sm:$0xff] }
  0xd7   :  { %3266 = vmatprep.subr.mxu1 %v1584_v52  ;;  %1598 = vmatprep.subr.mxu0 %v1578_v51  ;;  %v1849_v51 = vld [vmem:[%s4699_s5 + $0xc8] sm:$0xff]  ;;  %v1855_v15 = vld [vmem:[%s4699_s5 + $0xf8] sm:$0xff] }
  0xda   :  { %1599 = vmatpush1.msra.mxu0 %v1581_v54  ;;  %3267 = vmatpush3.msra.mxu1 %v1584_v52  ;;  %v1864_v52 = vld [vmem:[%s4699_s5 + $0x140] sm:$0xff]  ;;  %v3490_v54 = vpack.c.bf16 %v1831_v48, %v1830_v47 }
  0xdb   :  { %2997 = vmatmul.mubr.msk.f32.vlgmr.msra.gmra.mrb[0].mxu0 %vm98_vm0, %v2995_v37  ;;  %3269 = vmatmul.mubr.msk.f32.vlgmr.msra.gmra.mrb[0].mxu1 %vm98_vm0, %v2996_v53  ;;  %v1828_v37 = vld [vmem:[%s4699_s5 + $0x20] sm:$0xff] }
  0xdc   :  { %1664 = vmatprep.mubr.f32.mxu0 %v3891_v12  ;;  %3477 = vmatprep.subr.bf16.mxu1 %v3476_v28  ;;  %v3486_v45 = vpack.c.bf16 %v1829_v38, %v1828_v37  ;;  %v1853_v28 = vld [vmem:[%s4699_s5 + $0xe8] sm:$0xff]  ;;  %v1871_v38 = vld [vmem:[%s4699_s5 + $0x178] sm:$0xff] }
  0xdd   :  { %3479 = vmatpush3.bf16.msra.mxu1 %v3478_v32  ;;  %3509 = vmatprep.subr.bf16.mxu0 %v3508_v5  ;;  %v3500_v30 = vpack.c.bf16 %v1853_v28, %v1852_v27  ;;  %v1837_v32 = vld [vmem:[%s4699_s5 + $0x68] sm:$0xff] }
  0xde   :  { %3481 = vmatprep.subr.bf16.mxu1 %v3480_v14  ;;  %3511 = vmatpush3.bf16.msra.mxu0 %v3508_v5  ;;  %v3502_v5 = vpack.c.bf16 %v1837_v32, %v1836_v31  ;;  %v1854_v14 = vld [vmem:[%s4699_s5 + $0xf0] sm:$0xff] }
  0xdf   :  { %2998 = vmatmul.mubr.msk.f32.gmra.mrb[2].mxu0 %vm98_vm0, %v2996_v53  ;;  %3513 = vmatprep.subr.bf16.mxu0 %v3512_v34  ;;  %v1865_v53 = vld [vmem:[%s4699_s5 + $0x148] sm:$0xff]  ;;  %v3504_v16 = vpack.c.bf16 %v1855_v15, %v1854_v14 }
  0xe1   :  { %3483 = vmatpush3.bf16.msra.mxu1 %v3482_v11  ;;  %v1839_v11 = vld [vmem:[%s4699_s5 + $0x78] sm:$0xff] }
  0xe2   :  { %3485 = vmatprep.subr.bf16.mxu1 %v3484_v8  ;;  %3515 = vmatpush3.bf16.msra.mxu0 %v3512_v34  ;;  %v3506_v35 = vpack.c.bf16 %v1839_v11, %v1838_v33  ;;  %v1870_v8 = vld [vmem:[%s4699_s5 + $0x170] sm:$0xff]  ;;  %v2825_v33 = vld [vmem:[%s4701_s4 + $0x8] sm:$0xff]  ;;  %v2824_v11 = vld [vmem:[%s4701_s4] sm:$0xff] }
  0xe3   :  { %v1762_v56 = vpop.permute.xlu1 %1761  ;;  %3517 = vmatprep.subr.bf16.mxu0 %v3516_v40  ;;  %v3536_v10 = vpack.c.bf16 %v1871_v38, %v1870_v8 }
  0xe4   :  { %v1757_v55 = vpop.permute.xlu0 %1756 }
  0xe5   :  { %3487 = vmatpush3.bf16.msra.mxu1 %v3486_v45 }
  0xe6   :  { %3489 = vmatprep.subr.bf16.mxu1 %v3488_v46  ;;  %3519 = vmatpush3.bf16.msra.mxu0 %v3516_v40 }
  0xe7   :  { %3521 = vmatprep.subr.bf16.mxu0 %v3520_v49 }
  0xe9   :  { %3491 = vmatpush3.bf16.msra.mxu1 %v3490_v54 }
  0xea   :  { %3523 = vmatpush3.bf16.msra.mxu0 %v3520_v49 }
 0x1ae   :  { %v1660_v57 = vpop.f32.mrb[0].mxu0  ;;  %v3270_v58 = vpop.f32.mrb[0].mxu1 }
 0x1af   :  { %v4343_v59 = vadd.f32 %v1757_v55, %v1660_v57  ;;  %v1662_v60 = vpop.f32.mrb[1].mxu0  ;;  %v1737_v61 = vpop.f32.mrb[1].mxu1  ;;  %v4350_v1 = vadd.f32 %v3270_v58, %v1762_v56  ;;  %v1833_v57 = vld [vmem:[%s4699_s5 + $0x48] sm:$0xff]  ;;  %v3524_v58 = vpack.c.bf16 %v1865_v53, %v1864_v52 }
 0x1b0   :  { %v4345_v62 = vadd.f32 %v1757_v55, %v1662_v60  ;;  %v4348_v0 = vadd.f32 %v1757_v55, %v1737_v61  ;;  %v3492_v55 = vpack.c.bf16 %v1849_v51, %v1848_v50  ;;  %v1850_v60 = vld [vmem:[%s4699_s5 + $0xd0] sm:$0xff]  ;;  %v1851_v61 = vld [vmem:[%s4699_s5 + $0xd8] sm:$0xff] }
 0x1b1   :  { %v1770_v63 = vmax.f32 %v4343_v59, 0.0  ;;  %v1775_v20 = vmax.f32 %v4350_v1, 0.0  ;;  %3525 = vmatprep.subr.bf16.mxu0 %v3524_v58 }
 0x1b2   :  { %v1771_v12 = vmax.f32 %v4345_v62, 0.0  ;;  %v1666_v3 = vpop.f32.mrb[2].mxu0  ;;  %v1772_v18 = vmax.f32 %v4348_v0, 0.0  ;;  %3493 = vmatprep.subr.bf16.mxu1 %v3492_v55  ;;  %3527 = vmatpush3.bf16.msra.mxu0 %v3524_v58 }
 0x1b3   :  { %v4353_v6 = vadd.f32 %v1762_v56, %v1666_v3  ;;  %v1668_v9 = vpop.f32.mrb[3].mxu0  ;;  %v1866_v3 = vld [vmem:[%s4699_s5 + $0x150] sm:$0xff] }
 0x1b4   :  { %v3810_v13 = vpack.i.bf16 %v1771_v12, %v1770_v63  ;;  %v4359_v17 = vadd.f32 %v1762_v56, %v1668_v9  ;;  %v1832_v56 = vld [vmem:[%s4699_s5 + $0x40] sm:$0xff]  ;;  %v1867_v9 = vld [vmem:[%s4699_s5 + $0x158] sm:$0xff] }
 0x1b5   :  { %v1773_v19 = vmax.f32 %v4353_v6, 0.0  ;;  %v3528_v26 = vpack.c.bf16 %v1867_v9, %v1866_v3 }
 0x1b6   :  { %v1774_v21 = vmax.f32 %v4359_v17, 0.0  ;;  %3811 = vrot.lane.b32.xlu1 %v3810_v13, %s3895_s24  ;;  %v3494_v13 = vpack.c.bf16 %v1833_v57, %v1832_v56 }
 0x1b7   :  { %v3815_v23 = vpack.i.bf16 %v1773_v19, %v1772_v18  ;;  %3529 = vmatprep.subr.bf16.mxu0 %v3528_v26 }
 0x1b8   :  { %v3820_v24 = vpack.i.bf16 %v1775_v20, %v1774_v21  ;;  %3495 = vmatpush3.bf16.msra.mxu1 %v3494_v13  ;;  %3531 = vmatpush3.bf16.msra.mxu0 %v3528_v26 }
 0x1b9   :  { %3816 = vrot.lane.b32.xlu0 %v3815_v23, %s3895_s24  ;;  %v3496_v23 = vpack.c.bf16 %v1851_v61, %v1850_v60  ;;  %3533 = vmatprep.subr.bf16.mxu0 %v3532_v4 }
 0x1ba   :  { %3821 = vrot.lane.b32.xlu1 %v3820_v24, %s3895_s24  ;;  %v1834_v24 = vld [vmem:[%s4699_s5 + $0x50] sm:$0xff] }
 0x1bb   :  { %v3498_v29 = vpack.c.bf16 %v1835_v25, %v1834_v24  ;;  %3497 = vmatprep.subr.bf16.mxu1 %v3496_v23 }
 0x1bc   :  { %3535 = vmatpush3.bf16.msra.mxu0 %v3532_v4 }
 0x1bd   :  { %3499 = vmatpush3.bf16.msra.mxu1 %v3498_v29  ;;  %3537 = vmatprep.subr.bf16.mxu0 %v3536_v10 }
 0x1be   :  { %3501 = vmatprep.subr.bf16.mxu1 %v3500_v30 }
 0x1c0   :  { %3539 = vmatpush3.bf16.msra.mxu0 %v3536_v10 }
 0x1c1   :  { %3503 = vmatpush3.bf16.msra.mxu1 %v3502_v5 }
 0x1c2   :  { %3505 = vmatprep.subr.bf16.mxu1 %v3504_v16 }
 0x1c5   :  { %3507 = vmatpush3.bf16.msra.mxu1 %v3506_v35 }
 0x228   :  { %v3812_v34 = vpop.permute.xlu1 %3811 }
 0x229   :  { %v3814_v36 = vunpack.i.h.bf16 %v3812_v34  ;;  %v3813_v37 = vunpack.i.l.bf16 %v3812_v34 }
 0x22b   :  { %v3817_v39 = vpop.permute.xlu0 %3816  ;;  %v1790_v43 = vsel %vm990_vm5, %v3813_v37, %v3814_v36 }
 0x22c   :  { %v3819_v40 = vunpack.i.h.bf16 %v3817_v39  ;;  %v3818_v41 = vunpack.i.l.bf16 %v3817_v39  ;;  %v3822_v42 = vpop.permute.xlu1 %3821  ;;  %v1794_v53 = vmax.f32 %v1770_v63, %v1790_v43  ;;  %v3002_v43 = vld [vmem:[%s4700_s3 + $0x18] sm:$0xff] }
 0x22d   :  { %v3824_v44 = vunpack.i.h.bf16 %v3822_v42  ;;  %v3823_v45 = vunpack.i.l.bf16 %v3822_v42 }
 0x22e   :  { %v1788_v46 = vsel %vm990_vm5, %v3814_v36, %v3818_v41  ;;  %v1792_v47 = vsel %vm990_vm5, %v3818_v41, %v3813_v37 }
 0x22f   :  { %v1793_v48 = vsel %vm990_vm5, %v3824_v44, %v3819_v40  ;;  %v1789_v49 = vsel %vm990_vm5, %v3823_v45, %v3824_v44  ;;  %v1791_v50 = vsel %vm990_vm5, %v3819_v40, %v3823_v45  ;;  %v1795_v51 = vmax.f32 %v1771_v12, %v1788_v46  ;;  %v2026_v44 = vld [vmem:[%s4700_s3] sm:$0xff] }
 0x230   :  { %v1796_v52 = vmax.f32 %v1772_v18, %v1792_v47  ;;  %v1798_v54 = vmax.f32 %v1774_v21, %v1789_v49  ;;  %v1797_v57 = vmax.f32 %v1773_v19, %v1791_v50  ;;  %v1799_v58 = vmax.f32 %v1775_v20, %v1793_v48  ;;  %v2027_v49 = vld [vmem:[%s4700_s3 + $0x8] sm:$0xff]  ;;  %v3007_v50 = vld [vmem:[%s4700_s3 + $0x20] sm:$0xff] }
 0x232   :  { %v3825_v55 = vpack.i.bf16 %v1796_v52, %v1795_v51  ;;  %v3830_v56 = vpack.i.bf16 %v1798_v54, %v1794_v53  ;;  %v3835_v62 = vpack.i.bf16 %v1797_v57, %v1799_v58 }
 0x234   :  { %3826 = vrot.lane.b32.xlu0 %v3825_v55, %s3897_s26  ;;  %3831 = vrot.lane.b32.xlu1 %v3830_v56, %s3897_s26 }
 0x238   :  { %3836 = vrot.lane.b32.xlu0 %v3835_v62, %s3897_s26 }
 0x2a6   :  { %v3827_v59 = vpop.permute.xlu0 %3826  ;;  %v3832_v63 = vpop.permute.xlu1 %3831 }
 0x2a7   :  { %v3829_v0 = vunpack.i.h.bf16 %v3827_v59  ;;  %v3828_v12 = vunpack.i.l.bf16 %v3827_v59  ;;  %v3833_v17 = vunpack.i.l.bf16 %v3832_v63  ;;  %v3834_v61 = vunpack.i.h.bf16 %v3832_v63 }
 0x2a9   :  { %v1814_v18 = vsel %vm1380_vm7, %v3833_v17, %v3828_v12  ;;  %v1812_v6 = vsel %vm1380_vm7, %v3828_v12, %v3829_v0  ;;  %v1816_v1 = vsel %vm1380_vm7, %v3829_v0, %v3833_v17  ;;  %v3016_v12 = vld [vmem:[%s4700_s3 + $0x48] sm:$0xff]  ;;  %v3019_v17 = vld [vmem:[%s4700_s3 + $0x50] sm:$0xff] }
 0x2aa   :  { %v1818_v19 = vmax.f32 %v1794_v53, %v1814_v18  ;;  %v3837_v20 = vpop.permute.xlu0 %3836  ;;  %v1819_v21 = vmax.f32 %v1795_v51, %v1812_v6  ;;  %v1820_v60 = vmax.f32 %v1796_v52, %v1816_v1  ;;  %v3008_v52 = vld [vmem:[%s4700_s3 + $0x28] sm:$0xff]  ;;  %v3011_v53 = vld [vmem:[%s4700_s3 + $0x30] sm:$0xff] }
 0x2ab   :  { %v3839_v3 = vunpack.i.h.bf16 %v3837_v20  ;;  %v3838_v9 = vunpack.i.l.bf16 %v3837_v20  ;;  %v3020_v20 = vld [vmem:[%s4700_s3 + $0x58] sm:$0xff] }
 0x2ac   :  { %1936 = vmatprep.mubr.f32.mxu1 %v1819_v21  ;;  %3303 = vmatprep.mubr.f32.mxu0 %v1820_v60  ;;  %v3023_v21 = vld [vmem:[%s4700_s3 + $0x60] sm:$0xff] }
 0x2ad   :  { %v1817_v13 = vsel %vm1380_vm7, %v3838_v9, %v3839_v3  ;;  %1937 = vmatmul.mubr.f32.vlgmr.msra.gmra.mrb[2].mxu1 %v1818_v19  ;;  %v1813_v23 = vsel %vm1380_vm7, %v3834_v61, %v3838_v9  ;;  %v1815_v24 = vsel %vm1380_vm7, %v3839_v3, %v3834_v61 }
 0x2ae   :  { %v1823_v25 = vmax.f32 %v1799_v58, %v1817_v13  ;;  %v1822_v26 = vmax.f32 %v1798_v54, %v1813_v23  ;;  %v1821_v27 = vmax.f32 %v1797_v57, %v1815_v24  ;;  %v3012_v57 = vld [vmem:[%s4700_s3 + $0x38] sm:$0xff]  ;;  %v3015_v58 = vld [vmem:[%s4700_s3 + $0x40] sm:$0xff]  ;;  %v3024_v13 = vld [vmem:[%s4700_s3 + $0x68] sm:$0xff] }
 0x2af   :  { %v3027_v23 = vld [vmem:[%s4700_s3 + $0x70] sm:$0xff] }
 0x2b0   :  { %1941 = vmatprep.mubr.f32.mxu1 %v1822_v26  ;;  %3304 = vmatmul.mubr.f32.vlgmr.msra.gmra.mrb[4].mxu0 %v1823_v25  ;;  %v3028_v25 = vld [vmem:[%s4700_s3 + $0x78] sm:$0xff]  ;;  %v3031_v26 = vld [vmem:[%s4700_s3 + $0x80] sm:$0xff] }
 0x2b1   :  { %1942 = vmatmul.mubr.f32.gmra.mrb[4].mxu1 %v1821_v27  ;;  %v3032_v27 = vld [vmem:[%s4700_s3 + $0x88] sm:$0xff] }
 0x2b2   :  { %3310 = vmatprep.mubr.msk.f32.mxu1 %vm2035_vm9, %v3001_v22 }
 0x380   :  { %v3112_v28 = vpop.f32.mrb[2].mxu1 }
 0x381   :  { %v3113_v29 = vpop.f32.mrb[3].mxu1 }
 0x382   :  { %v3114_v30 = vadd.f32 %v3113_v29, %v3112_v28 }
 0x383   :  { %v3305_v31 = vpop.f32.mrb[4].mxu0 }
 0x384   :  { %v3115_v32 = vpop.f32.mrb[4].mxu1  ;;  %v2013_v5 = vpop.f32.mrb[5].mxu0 }
 0x385   :  { %v2014_v7 = vadd.f32 %v3114_v30, %v2013_v5  ;;  %v3116_v2 = vpop.f32.mrb[5].mxu1 }
 0x386   :  { %v3117_v4 = vadd.f32 %v3116_v2, %v3115_v32  ;;  %v2853_v2 = vld [vmem:[%s4702_s6 + $0x8] sm:$0xff] }
 0x388   :  { %v2019_v14 = vadd.f32 %v3305_v31, %v3117_v4  ;;  %v2854_v4 = vld [vmem:[%s4702_s6 + $0x10] sm:$0xff] }
 0x38a   :  { %v3845_v15 = vpack.i.bf16 %v2019_v14, %v2014_v7  ;;  %v3556_v16 = vpack.c.bf16 %v2019_v14, %v2014_v7  ;;  %v2852_v7 = vld [vmem:[%s4702_s6] sm:$0xff] }
 0x38b   :  { %v3576_v14 = vpack.c.bf16 %v2853_v2, %v2852_v7 }
 0x38c   :  { %3846 = vrot.lane.b32.xlu0 %v3845_v15, %s3900_s0  ;;  %3841 = vrot.lane.b32.xlu1 %v3845_v15, %s3901_s25 }
 0x38d   :  { %3577 = vmatprep.subr.bf16.mxu0 %v3576_v14 }
 0x38e   :  { %3579 = vmatpush3.bf16.msra.mxu0 %v3576_v14 }
 0x390   :  { %3856 = vrot.lane.b32.xlu0 %v3845_v15, %s3894_s23  ;;  %3851 = vrot.lane.b32.xlu1 %v3845_v15, %s3902_s27 }
 0x394   :  { %3866 = vrot.lane.b32.xlu0 %v3845_v15, %s3903_s28  ;;  %3861 = vrot.lane.b32.xlu1 %v3845_v15, %s3895_s24 }
 0x398   :  { %3876 = vrot.lane.b32.xlu0 %v3845_v15, %s3904_s29  ;;  %3871 = vrot.lane.b32.xlu1 %v3845_v15, %s3905_s30  ;;  %v2855_v15 = vld [vmem:[%s4702_s6 + $0x18] sm:$0xff] }
 0x39c   :  { %2833 = vperm.xlu0 %3808, %v2825_v33   ;;  %2828 = vperm.xlu1 %3809, %v2824_v11   ;;  %v3580_v33 = vpack.c.bf16 %v2855_v15, %v2854_v4  ;;  %v2856_v11 = vld [vmem:[%s4702_s6 + $0x20] sm:$0xff] }
 0x39e   :  { %3581 = vmatprep.subr.bf16.mxu0 %v3580_v33 }
 0x39f   :  { %3583 = vmatpush3.bf16.msra.mxu0 %v3580_v33 }
 0x3fe   :  { %v3847_v34 = vpop.permute.xlu0 %3846  ;;  %v3842_v35 = vpop.permute.xlu1 %3841 }
 0x3ff   :  { %v3849_v36 = vunpack.i.h.bf16 %v3847_v34  ;;  %v3848_v37 = vunpack.i.l.bf16 %v3847_v34  ;;  %v3844_v8 = vunpack.i.h.bf16 %v3842_v35  ;;  %v3843_v38 = vunpack.i.l.bf16 %v3842_v35  ;;  %v2857_v34 = vld [vmem:[%s4702_s6 + $0x28] sm:$0xff] }
 0x401   :  { %v3540_v10 = vpack.c.bf16 %v3844_v8, %v3843_v38  ;;  %v3544_v40 = vpack.c.bf16 %v3849_v36, %v3848_v37  ;;  %v3584_v36 = vpack.c.bf16 %v2857_v34, %v2856_v11  ;;  %v2858_v37 = vld [vmem:[%s4702_s6 + $0x30] sm:$0xff]  ;;  %v2859_v8 = vld [vmem:[%s4702_s6 + $0x38] sm:$0xff] }
 0x402   :  { %v3852_v39 = vpop.permute.xlu1 %3851  ;;  %v3857_v46 = vpop.permute.xlu0 %3856  ;;  %v3588_v38 = vpack.c.bf16 %v2859_v8, %v2858_v37 }
 0x403   :  { %v3854_v41 = vunpack.i.h.bf16 %v3852_v39  ;;  %v3853_v42 = vunpack.i.l.bf16 %v3852_v39  ;;  %3541 = vmatprep.subr.bf16.mxu1 %v3540_v10  ;;  %v3859_v47 = vunpack.i.h.bf16 %v3857_v46  ;;  %v3858_v48 = vunpack.i.l.bf16 %v3857_v46  ;;  %3585 = vmatprep.subr.bf16.mxu0 %v3584_v36  ;;  %v2861_v39 = vld [vmem:[%s4702_s6 + $0x48] sm:$0xff] }
 0x404   :  { %3543 = vmatpush3.bf16.msra.mxu1 %v3540_v10  ;;  %v2860_v10 = vld [vmem:[%s4702_s6 + $0x40] sm:$0xff]  ;;  %3587 = vmatpush3.bf16.msra.mxu0 %v3584_v36 }
 0x405   :  { %3545 = vmatprep.subr.bf16.mxu1 %v3544_v40  ;;  %v3548_v45 = vpack.c.bf16 %v3854_v41, %v3853_v42  ;;  %v3552_v51 = vpack.c.bf16 %v3859_v47, %v3858_v48  ;;  %3589 = vmatprep.subr.bf16.mxu0 %v3588_v38  ;;  %v2862_v41 = vld [vmem:[%s4702_s6 + $0x50] sm:$0xff]  ;;  %v2863_v42 = vld [vmem:[%s4702_s6 + $0x58] sm:$0xff] }
 0x406   :  { %v3862_v54 = vpop.permute.xlu1 %3861  ;;  %v3867_v59 = vpop.permute.xlu0 %3866  ;;  %v2866_v47 = vld [vmem:[%s4702_s6 + $0x70] sm:$0xff]  ;;  %v2867_v48 = vld [vmem:[%s4702_s6 + $0x78] sm:$0xff] }
 0x407   :  { %3311 = vmatmul.mubr.msk.f32.vlgmr.msra.gmra.mrb[6].mxu1 %vm2035_vm9, %v3002_v43  ;;  %v3864_v55 = vunpack.i.h.bf16 %v3862_v54  ;;  %v3863_v56 = vunpack.i.l.bf16 %v3862_v54  ;;  %v3869_v63 = vunpack.i.h.bf16 %v3867_v59  ;;  %v3868_v0 = vunpack.i.l.bf16 %v3867_v59 }
 0x408   :  { %3547 = vmatpush3.bf16.msra.mxu1 %v3544_v40  ;;  %3317 = vmatprep.mubr.msk.f32.mxu1 %vm2035_vm9, %v2026_v44  ;;  %v3592_v40 = vpack.c.bf16 %v2861_v39, %v2860_v10  ;;  %v3596_v43 = vpack.c.bf16 %v2863_v42, %v2862_v41  ;;  %v2864_v44 = vld [vmem:[%s4702_s6 + $0x60] sm:$0xff] }
 0x409   :  { %3549 = vmatprep.subr.bf16.mxu1 %v3548_v45  ;;  %v3560_v62 = vpack.c.bf16 %v3864_v55, %v3863_v56  ;;  %v3564_v18 = vpack.c.bf16 %v3869_v63, %v3868_v0  ;;  %3591 = vmatpush3.bf16.msra.mxu0 %v3588_v38 }
 0x40a   :  { %v3872_v6 = vpop.permute.xlu1 %3871  ;;  %v3877_v61 = vpop.permute.xlu0 %3876  ;;  %3593 = vmatprep.subr.bf16.mxu0 %v3592_v40 }
 0x40b   :  { %v3874_v1 = vunpack.i.h.bf16 %v3872_v6  ;;  %v3873_v19 = vunpack.i.l.bf16 %v3872_v6  ;;  %v3879_v3 = vunpack.i.h.bf16 %v3877_v61  ;;  %v3878_v9 = vunpack.i.l.bf16 %v3877_v61 }
 0x40d   :  { %v3568_v60 = vpack.c.bf16 %v3874_v1, %v3873_v19  ;;  %v3572_v24 = vpack.c.bf16 %v3879_v3, %v3878_v9  ;;  %3595 = vmatpush3.bf16.msra.mxu0 %v3592_v40 }
 0x40e   :  { %3597 = vmatprep.subr.bf16.mxu0 %v3596_v43 }
 0x40f   :  { %3318 = vmatmul.mubr.msk.f32.vlgmr.msra.gmra.mrb[6].mxu1 %vm2035_vm9, %v2027_v49  ;;  %v3604_v49 = vpack.c.bf16 %v2867_v48, %v2866_v47 }
 0x410   :  { %3551 = vmatpush3.bf16.msra.mxu1 %v3548_v45  ;;  %3324 = vmatprep.mubr.msk.f32.mxu1 %vm2035_vm9, %v3007_v50  ;;  %v2865_v45 = vld [vmem:[%s4702_s6 + $0x68] sm:$0xff] }
 0x411   :  { %3553 = vmatprep.subr.bf16.mxu1 %v3552_v51  ;;  %v3600_v46 = vpack.c.bf16 %v2865_v45, %v2864_v44  ;;  %3599 = vmatpush3.bf16.msra.mxu0 %v3596_v43 }
 0x413   :  { %3601 = vmatprep.subr.bf16.mxu0 %v3600_v46 }
 0x415   :  { %3603 = vmatpush3.bf16.msra.mxu0 %v3600_v46 }
 0x416   :  { %3605 = vmatprep.subr.bf16.mxu0 %v3604_v49 }
 0x417   :  { %3325 = vmatmul.mubr.msk.f32.vlgmr.msra.gmra.mrb[6].mxu1 %vm2035_vm9, %v3008_v52 }
 0x418   :  { %3555 = vmatpush3.bf16.msra.mxu1 %v3552_v51  ;;  %3331 = vmatprep.mubr.msk.f32.mxu1 %vm2035_vm9, %v3011_v53 }
 0x419   :  { %3557 = vmatprep.subr.bf16.mxu1 %v3556_v16  ;;  %3607 = vmatpush3.bf16.msra.mxu0 %v3604_v49 }
 0x41b   :  { %v2834_v28 = vpop.permute.xlu0 %2833  ;;  %v2829_v30 = vpop.permute.xlu1 %2828 }
 0x41f   :  { %3332 = vmatmul.mubr.msk.f32.vlgmr.msra.gmra.mrb[6].mxu1 %vm2035_vm9, %v3012_v57 }
 0x420   :  { %3559 = vmatpush3.bf16.msra.mxu1 %v3556_v16  ;;  %3338 = vmatprep.mubr.msk.f32.mxu1 %vm2035_vm9, %v3015_v58 }
 0x421   :  { %3561 = vmatprep.subr.bf16.mxu1 %v3560_v62 }
 0x427   :  { %3339 = vmatmul.mubr.msk.f32.vlgmr.msra.gmra.mrb[6].mxu1 %vm2035_vm9, %v3016_v12 }
 0x428   :  { %3563 = vmatpush3.bf16.msra.mxu1 %v3560_v62  ;;  %3345 = vmatprep.mubr.msk.f32.mxu1 %vm2035_vm9, %v3019_v17 }
 0x429   :  { %3565 = vmatprep.subr.bf16.mxu1 %v3564_v18 }
 0x42f   :  { %3346 = vmatmul.mubr.msk.f32.vlgmr.msra.gmra.mrb[6].mxu1 %vm2035_vm9, %v3020_v20 }
 0x430   :  { %3567 = vmatpush3.bf16.msra.mxu1 %v3564_v18  ;;  %3352 = vmatprep.mubr.msk.f32.mxu1 %vm2035_vm9, %v3023_v21 }
 0x431   :  { %3569 = vmatprep.subr.bf16.mxu1 %v3568_v60 }
 0x437   :  { %3353 = vmatmul.mubr.msk.f32.vlgmr.msra.gmra.mrb[6].mxu1 %vm2035_vm9, %v3024_v13 }
 0x438   :  { %3571 = vmatpush3.bf16.msra.mxu1 %v3568_v60  ;;  %3359 = vmatprep.mubr.msk.f32.mxu1 %vm2035_vm9, %v3027_v23 }
 0x439   :  { %3573 = vmatprep.subr.bf16.mxu1 %v3572_v24 }
 0x43f   :  { %3360 = vmatmul.mubr.msk.f32.vlgmr.msra.gmra.mrb[6].mxu1 %vm2035_vm9, %v3028_v25 }
 0x440   :  { %3575 = vmatpush3.bf16.msra.mxu1 %v3572_v24  ;;  %3366 = vmatprep.mubr.msk.f32.mxu1 %vm2035_vm9, %v3031_v26 }
 0x447   :  { %3367 = vmatmul.mubr.msk.f32.vlgmr.msra.gmra.mrb[6].mxu1 %vm2035_vm9, %v3032_v27 }
 0x51a   :  { %v3368_v29 = vpop.f32.mrb[6].mxu1 }
 0x51b   :  { %v2837_v31 = vadd.f32 %v3368_v29, %v2834_v28  ;;  %v2813_v32 = vpop.f32.mrb[7].mxu1 }
 0x51c   :  { %v2836_v5 = vadd.f32 %v2829_v30, %v2813_v32 }
 0x51d   :  { %v2839_v22 = vmax.f32 %v2837_v31, 0.0 }
 0x51e   :  { %v2838_v16 = vmax.f32 %v2836_v5, 0.0 }
 0x520   :  { %v3880_v35 = vpack.i.bf16 %v2839_v22, %v2838_v16 }
 0x522   :  { %3881 = vrot.lane.b32.xlu1 %v3880_v35, %s3895_s24 }
 0x594   :  { %v3882_v50 = vpop.permute.xlu1 %3881 }
 0x595   :  { %v3884_v51 = vunpack.i.h.bf16 %v3882_v50  ;;  %v3883_v52 = vunpack.i.l.bf16 %v3882_v50 }
 0x597   :  { %v2845_v53 = vmax.f32 %v2839_v22, %v3884_v51  ;;  %v2844_v54 = vmax.f32 %v2838_v16, %v3883_v52 }
 0x599   :  { %v3885_v55 = vpack.i.bf16 %v2845_v53, %v2844_v54 }
 0x59b   :  { %3886 = vrot.lane.b32.xlu0 %v3885_v55, %s3905_s30 }
 0x60d   :  { %v3887_v56 = vpop.permute.xlu0 %3886 }
 0x60e   :  { %v3889_v57 = vunpack.i.h.bf16 %v3887_v56  ;;  %v3888_v58 = vunpack.i.l.bf16 %v3887_v56 }
 0x610   :  { %v2851_v62 = vmax.f32 %v2845_v53, %v3889_v57  ;;  %v2850_v59 = vmax.f32 %v2844_v54, %v3888_v58 }
 0x612   :  { %3401 = vmatprep.mubr.f32.mxu0 %v2850_v59 }
 0x613   :  { %3402 = vmatmul.mubr.f32.vlgmr.msra.gmra.mrb[6].mxu0 %v2851_v62 }
 0x6e6   :  { %v3403_v63 = vpop.f32.mrb[6].mxu0 }
 0x6e7   :  { %2944 = vst [vmem:[%s4703_s7 + $0x8] sm:$0xff] %v3403_v63  ;;  %v2934_v0 = vpop.f32.mrb[7].mxu0 }
 0x6e8   :  { %2943 = vst [vmem:[%s4703_s7] sm:$0xff] %v2934_v0 }

</bundles_post_ra>
